<compile_context>
chip_gen: v7x
topology: tpu7x:2x2x1
jax: 0.10.0
libtpu: 0.0.40
codegen_flags: <defaults>
</compile_context>

<pallas_src>
import numpy as np
import jax
import jax.numpy as jnp
from jax import lax
from jax.experimental import pallas as pl
from jax.experimental.pallas import tpu as pltpu

# ---- module hyper-parameters (small, consistent with the PyTorch module) ----
N      = 64    # number of nodes
F_IN   = 32    # num_features
H      = 16    # hidden
ORDER  = 4     # order (25 in the original script; small here)
K      = 5
ALPHA  = 0.1
C      = 4     # num_classes
B      = 2     # batch of independent feature matrices (feeds both TCs on v7x)

NO = ORDER * N      # stacked node axis (branches along lanes)


# ----------------------------- fused forward kernel --------------------------
def higcn_kernel(x_ref, hl_t_ref, fw_ref, w_in_t_ref, b_in_t_ref,
                 w_out_r_ref, b_out_ref, out_ref, hl_bd, xxT):
    # 1) assemble block-diagonal HL^T (ORDER*N, ORDER*N) in VMEM from compact input
    hl_bd[...] = jnp.zeros_like(hl_bd)
    for i in range(ORDER):                                     # static unroll
        hl_bd[i * N:(i + 1) * N, i * N:(i + 1) * N] = hl_t_ref[i]

    # 2) per-branch input Linear, emitted directly into lane slices of xxT (H, ORDER*N)
    #    xxT_i = W_in[i]^T @ x^T  computed as a trans_b contraction (no explicit x^T).
    x = x_ref[0]                                               # (N, F)
    for i in range(ORDER):
        xxT[:, i * N:(i + 1) * N] = (
            lax.dot_general(w_in_t_ref[i], x,
                            (((1,), (1,)), ((), ())),
                            preferred_element_type=jnp.float32)
            + b_in_t_ref[i])                                   # (H, N) + (H, 1)

    # 3) HiGCN_prop for all branches at once: xxT_new = xxT @ blockdiag(HL_i^T)
    hl_mat = hl_bd[...]                                        # (ORDER*N, ORDER*N)
    xx = xxT[...]                                              # (H, ORDER*N)
    acc = xx * fw_ref[0:1, :]                                  # lane-major fW row bcast
    for k in range(K):                                         # static unroll, K = 5
        xx = jnp.dot(xx, hl_mat, preferred_element_type=jnp.float32)
        acc = acc + fw_ref[k + 1:k + 2, :] * xx

    # 4) output Linear (== concat(dim=1) @ W_out + b_out) as a sum of branch blocks:
    #    logits (N, C) = sum_i acc_i @ W_out_i  with acc_i^T = acc[:, i*N:(i+1)*N]
    logits = jnp.zeros((N, C), jnp.float32) + b_out_ref[...]
    for i in range(ORDER):
        logits = logits + lax.dot_general(
            acc[:, i * N:(i + 1) * N], w_out_r_ref[i],
            (((0,), (0,)), ((), ())),
            preferred_element_type=jnp.float32)                # (N, C)

    # 5) stabilized log_softmax over classes (tiny output, fine as-is)
    m = jnp.max(logits, axis=-1, keepdims=True)
    z = logits - m
    lse = jnp.log(jnp.sum(jnp.exp(z), axis=-1, keepdims=True))
    out_ref[0] = z - lse


# ---------------- one-time parameter / graph layout preparation ---------------
def prepare_params(hl, fw, w_in, b_in, w_out, b_out):
    """Hoisted out of the per-call path: HL and the parameters are fixed."""
    hl_t = jnp.transpose(hl, (0, 2, 1))            # (ORDER, N, N): HL_i^T
    fw_lane = jnp.repeat(fw.T, N, axis=1)          # (K+1, ORDER*N) lane-major table
    w_in_t = jnp.transpose(w_in, (0, 2, 1))        # (ORDER, H, F_IN)
    b_in_t = jnp.transpose(b_in, (0, 2, 1))        # (ORDER, H, 1)
    w_out_r = w_out.reshape(ORDER, H, C)           # (ORDER, H, C): per-branch slices
    return (hl_t, fw_lane, w_in_t, b_in_t, w_out_r, b_out)


def higcn_forward(x, params):
    hl_t, fw_lane, w_in_t, b_in_t, w_out_r, b_out = params
    batch = x.shape[0]
    in_specs = [
        pl.BlockSpec((1, N, F_IN), lambda b: (b, 0, 0)),       # x: per-batch block
        pl.BlockSpec((ORDER, N, N), lambda b: (0, 0, 0)),      # HL^T (compact)
        pl.BlockSpec((K + 1, NO), lambda b: (0, 0)),           # fW lane-major
        pl.BlockSpec((ORDER, H, F_IN), lambda b: (0, 0, 0)),   # W_in^T
        pl.BlockSpec((ORDER, H, 1), lambda b: (0, 0, 0)),      # b_in^T
        pl.BlockSpec((ORDER, H, C), lambda b: (0, 0, 0)),      # W_out per-branch
        pl.BlockSpec((1, C), lambda b: (0, 0)),                # b_out
    ]
    out_specs = pl.BlockSpec((1, N, C), lambda b: (b, 0, 0))
    return pl.pallas_call(
        higcn_kernel,
        out_shape=jax.ShapeDtypeStruct((batch, N, C), jnp.float32),
        grid=(batch,),
        in_specs=in_specs,
        out_specs=out_specs,
        scratch_shapes=[
            pltpu.VMEM((NO, NO), jnp.float32),   # block-diagonal HL^T
            pltpu.VMEM((H, NO), jnp.float32),    # transposed activation xxT
        ],
        compiler_params=pltpu.CompilerParams(
            dimension_semantics=("parallel",)),
    )(x, hl_t, fw_lane, w_in_t, b_in_t, w_out_r, b_out)


# --------------------------- pure-JAX reference -------------------------------
def reference(x, hl, fw, w_in, b_in, w_out, b_out):
    outs = []
    for i in range(ORDER):
        xx = x @ w_in[i] + b_in[i]                         # (B, N, H)
        acc = xx * fw[i, 0]
        for k in range(K):
            xx = jnp.einsum('ab,nbh->nah', hl[i], xx)      # HL_i @ xx (batched)
            acc = acc + fw[i, k + 1] * xx
        outs.append(acc)
    xc = jnp.concatenate(outs, axis=-1)                    # (B, N, ORDER*H)
    logits = xc @ w_out + b_out
    return jax.nn.log_softmax(logits, axis=-1)


if __name__ == "__main__":
    key = jax.random.PRNGKey(0)
    k_x, k_hl, k_win, k_bin, k_wout, k_bout = jax.random.split(key, 6)

    # inputs
    x = jax.random.normal(k_x, (B, N, F_IN), dtype=jnp.float32)
    hl_raw = jax.random.uniform(k_hl, (ORDER, N, N), dtype=jnp.float32)
    hl = hl_raw / jnp.sum(hl_raw, axis=-1, keepdims=True)   # row-normalized dense "HL"

    # deterministic parameter init
    w_in = 0.1 * jax.random.normal(k_win, (ORDER, F_IN, H), dtype=jnp.float32)
    b_in = 0.1 * jax.random.normal(k_bin, (ORDER, 1, H), dtype=jnp.float32)
    w_out = 0.1 * jax.random.normal(k_wout, (ORDER * H, C), dtype=jnp.float32)
    b_out = 0.1 * jax.random.normal(k_bout, (1, C), dtype=jnp.float32)

    # HiGCN_prop.reset_parameters(): fW[k] = alpha*(1-alpha)^k, fW[K] = (1-alpha)^K,
    # plus a tiny deterministic per-branch scale (each hgc[i] owns its own fW
    # parameter) so per-branch indexing is genuinely exercised by the check.
    fw_row = np.array([ALPHA * (1.0 - ALPHA) ** k for k in range(K + 1)],
                      dtype=np.float32)
    fw_row[-1] = (1.0 - ALPHA) ** K
    fw_np = (np.tile(fw_row[None, :], (ORDER, 1))
             * (1.0 + 0.01 * np.arange(ORDER, dtype=np.float32))[:, None])
    fw = jnp.asarray(fw_np)                                   # (ORDER, K+1)

    # one-time layout preparation (parameter-build time, not per forward)
    params = jax.tree_util.tree_map(jax.block_until_ready,
                                    prepare_params(hl, fw, w_in, b_in, w_out, b_out))

    out = jax.block_until_ready(higcn_forward(x, params))

    ref = reference(x, hl, fw, w_in, b_in, w_out, b_out)
    np.testing.assert_allclose(np.asarray(out), np.asarray(ref),
                               rtol=1e-4, atol=1e-4)
    print("KERNEL_OK")
</pallas_src>

<mosaic_0001>
module attributes {stable_mosaic.version = 11 : i64} {
  func.func @higcn_kernel(%arg0: i32, %arg1: memref<1x64x32xf32, #tpu.memory_space<vmem>>, %arg2: memref<4x64x64xf32, #tpu.memory_space<vmem>>, %arg3: memref<6x256xf32, #tpu.memory_space<vmem>>, %arg4: memref<4x16x32xf32, #tpu.memory_space<vmem>>, %arg5: memref<4x16x1xf32, #tpu.memory_space<vmem>>, %arg6: memref<4x16x4xf32, #tpu.memory_space<vmem>>, %arg7: memref<1x4xf32, #tpu.memory_space<vmem>>, %arg8: memref<1x64x4xf32, #tpu.memory_space<vmem>>, %arg9: memref<256x256xf32, #tpu.memory_space<vmem>>, %arg10: memref<16x256xf32, #tpu.memory_space<vmem>>) attributes {dimension_semantics = [#tpu.dimension_semantics<parallel>], iteration_bounds = array<i64: 2>, scalar_prefetch = 0 : i64, scratch_operands = 2 : i64, tpu.core_type = #tpu.core_type<tc>, window_params = [{transform_indices = @transform_0, window_bounds = array<i64: 1, 64, 32>}, {pipeline_mode = #tpu.pipeline_mode<synchronous>, transform_indices = @transform_1, window_bounds = array<i64: 4, 64, 64>}, {pipeline_mode = #tpu.pipeline_mode<synchronous>, transform_indices = @transform_2, window_bounds = array<i64: 6, 256>}, {pipeline_mode = #tpu.pipeline_mode<synchronous>, transform_indices = @transform_3, window_bounds = array<i64: 4, 16, 32>}, {pipeline_mode = #tpu.pipeline_mode<synchronous>, transform_indices = @transform_4, window_bounds = array<i64: 4, 16, 1>}, {pipeline_mode = #tpu.pipeline_mode<synchronous>, transform_indices = @transform_5, window_bounds = array<i64: 4, 16, 4>}, {pipeline_mode = #tpu.pipeline_mode<synchronous>, transform_indices = @transform_6, window_bounds = array<i64: 1, 4>}, {transform_indices = @transform_7, window_bounds = array<i64: 1, 64, 4>}]} {
    %cst = arith.constant 0.000000e+00 : f32
    %0 = vector.broadcast %cst : f32 to vector<256x256xf32>
    %c0 = arith.constant 0 : index
    %c0_0 = arith.constant 0 : index
    %1 = vector.load %arg9[%c0, %c0_0] : memref<256x256xf32, #tpu.memory_space<vmem>>, vector<256x256xf32>
    tpu.vector_store %arg9[%c0, %c0_0], %0 {strides = array<i32>} : memref<256x256xf32, #tpu.memory_space<vmem>>, vector<256x256xf32>,
    %c0_1 = arith.constant 0 : index
    %c0_2 = arith.constant 0 : index
    %c0_3 = arith.constant 0 : index
    %2 = vector.load %arg2[%c0_1, %c0_2, %c0_3] : memref<4x64x64xf32, #tpu.memory_space<vmem>>, vector<1x64x64xf32>
    %3 = vector.shape_cast %2 : vector<1x64x64xf32> to vector<64x64xf32>
    %c0_4 = arith.constant 0 : index
    %c0_5 = arith.constant 0 : index
    %4 = vector.load %arg9[%c0_4, %c0_5] : memref<256x256xf32, #tpu.memory_space<vmem>>, vector<64x64xf32>
    tpu.vector_store %arg9[%c0_4, %c0_5], %3 {strides = array<i32>} : memref<256x256xf32, #tpu.memory_space<vmem>>, vector<64x64xf32>,
    %c1 = arith.constant 1 : index
    %c0_6 = arith.constant 0 : index
    %c0_7 = arith.constant 0 : index
    %5 = vector.load %arg2[%c1, %c0_6, %c0_7] : memref<4x64x64xf32, #tpu.memory_space<vmem>>, vector<1x64x64xf32>
    %6 = vector.shape_cast %5 : vector<1x64x64xf32> to vector<64x64xf32>
    %c64 = arith.constant 64 : index
    %c64_8 = arith.constant 64 : index
    %7 = vector.load %arg9[%c64, %c64_8] : memref<256x256xf32, #tpu.memory_space<vmem>>, vector<64x64xf32>
    tpu.vector_store %arg9[%c64, %c64_8], %6 {strides = array<i32>} : memref<256x256xf32, #tpu.memory_space<vmem>>, vector<64x64xf32>,
    %c2 = arith.constant 2 : index
    %c0_9 = arith.constant 0 : index
    %c0_10 = arith.constant 0 : index
    %8 = vector.load %arg2[%c2, %c0_9, %c0_10] : memref<4x64x64xf32, #tpu.memory_space<vmem>>, vector<1x64x64xf32>
    %9 = vector.shape_cast %8 : vector<1x64x64xf32> to vector<64x64xf32>
    %c128 = arith.constant 128 : index
    %c128_11 = arith.constant 128 : index
    %10 = vector.load %arg9[%c128, %c128_11] : memref<256x256xf32, #tpu.memory_space<vmem>>, vector<64x64xf32>
    tpu.vector_store %arg9[%c128, %c128_11], %9 {strides = array<i32>} : memref<256x256xf32, #tpu.memory_space<vmem>>, vector<64x64xf32>,
    %c3 = arith.constant 3 : index
    %c0_12 = arith.constant 0 : index
    %c0_13 = arith.constant 0 : index
    %11 = vector.load %arg2[%c3, %c0_12, %c0_13] : memref<4x64x64xf32, #tpu.memory_space<vmem>>, vector<1x64x64xf32>
    %12 = vector.shape_cast %11 : vector<1x64x64xf32> to vector<64x64xf32>
    %c192 = arith.constant 192 : index
    %c192_14 = arith.constant 192 : index
    %13 = vector.load %arg9[%c192, %c192_14] : memref<256x256xf32, #tpu.memory_space<vmem>>, vector<64x64xf32>
    tpu.vector_store %arg9[%c192, %c192_14], %12 {strides = array<i32>} : memref<256x256xf32, #tpu.memory_space<vmem>>, vector<64x64xf32>,
    %c0_15 = arith.constant 0 : index
    %c0_16 = arith.constant 0 : index
    %c0_17 = arith.constant 0 : index
    %14 = vector.load %arg1[%c0_15, %c0_16, %c0_17] : memref<1x64x32xf32, #tpu.memory_space<vmem>>, vector<1x64x32xf32>
    %15 = vector.shape_cast %14 : vector<1x64x32xf32> to vector<64x32xf32>
    %c0_18 = arith.constant 0 : index
    %c0_19 = arith.constant 0 : index
    %c0_20 = arith.constant 0 : index
    %16 = vector.load %arg4[%c0_18, %c0_19, %c0_20] : memref<4x16x32xf32, #tpu.memory_space<vmem>>, vector<1x16x32xf32>
    %17 = vector.shape_cast %16 : vector<1x16x32xf32> to vector<16x32xf32>
    %cst_21 = arith.constant dense<0.000000e+00> : vector<16x64xf32>
    %18 = tpu.matmul %17, %15, %cst_21 {dimension_numbers = #tpu.dot_dimension_numbers<[1], [1], [0], [0], [0, 0, 1, 0], [], []>} : vector<16x32xf32>, vector<64x32xf32>, vector<16x64xf32> -> vector<16x64xf32>
    %c0_22 = arith.constant 0 : index
    %c0_23 = arith.constant 0 : index
    %c0_24 = arith.constant 0 : index
    %19 = vector.load %arg5[%c0_22, %c0_23, %c0_24] : memref<4x16x1xf32, #tpu.memory_space<vmem>>, vector<1x16x1xf32>
    %20 = vector.shape_cast %19 : vector<1x16x1xf32> to vector<16x1xf32>
    %21 = vector.broadcast %20 : vector<16x1xf32> to vector<16x64xf32>
    %22 = arith.addf %18, %21 : vector<16x64xf32>
    %c0_25 = arith.constant 0 : index
    %c0_26 = arith.constant 0 : index
    %23 = vector.load %arg10[%c0_25, %c0_26] : memref<16x256xf32, #tpu.memory_space<vmem>>, vector<16x64xf32>
    tpu.vector_store %arg10[%c0_25, %c0_26], %22 {strides = array<i32>} : memref<16x256xf32, #tpu.memory_space<vmem>>, vector<16x64xf32>,
    %c1_27 = arith.constant 1 : index
    %c0_28 = arith.constant 0 : index
    %c0_29 = arith.constant 0 : index
    %24 = vector.load %arg4[%c1_27, %c0_28, %c0_29] : memref<4x16x32xf32, #tpu.memory_space<vmem>>, vector<1x16x32xf32>
    %25 = vector.shape_cast %24 : vector<1x16x32xf32> to vector<16x32xf32>
    %cst_30 = arith.constant dense<0.000000e+00> : vector<16x64xf32>
    %26 = tpu.matmul %25, %15, %cst_30 {dimension_numbers = #tpu.dot_dimension_numbers<[1], [1], [0], [0], [0, 0, 1, 0], [], []>} : vector<16x32xf32>, vector<64x32xf32>, vector<16x64xf32> -> vector<16x64xf32>
    %c1_31 = arith.constant 1 : index
    %c0_32 = arith.constant 0 : index
    %c0_33 = arith.constant 0 : index
    %27 = vector.load %arg5[%c1_31, %c0_32, %c0_33] : memref<4x16x1xf32, #tpu.memory_space<vmem>>, vector<1x16x1xf32>
    %28 = vector.shape_cast %27 : vector<1x16x1xf32> to vector<16x1xf32>
    %29 = vector.broadcast %28 : vector<16x1xf32> to vector<16x64xf32>
    %30 = arith.addf %26, %29 : vector<16x64xf32>
    %c0_34 = arith.constant 0 : index
    %c64_35 = arith.constant 64 : index
    %31 = vector.load %arg10[%c0_34, %c64_35] : memref<16x256xf32, #tpu.memory_space<vmem>>, vector<16x64xf32>
    tpu.vector_store %arg10[%c0_34, %c64_35], %30 {strides = array<i32>} : memref<16x256xf32, #tpu.memory_space<vmem>>, vector<16x64xf32>,
    %c2_36 = arith.constant 2 : index
    %c0_37 = arith.constant 0 : index
    %c0_38 = arith.constant 0 : index
    %32 = vector.load %arg4[%c2_36, %c0_37, %c0_38] : memref<4x16x32xf32, #tpu.memory_space<vmem>>, vector<1x16x32xf32>
    %33 = vector.shape_cast %32 : vector<1x16x32xf32> to vector<16x32xf32>
    %cst_39 = arith.constant dense<0.000000e+00> : vector<16x64xf32>
    %34 = tpu.matmul %33, %15, %cst_39 {dimension_numbers = #tpu.dot_dimension_numbers<[1], [1], [0], [0], [0, 0, 1, 0], [], []>} : vector<16x32xf32>, vector<64x32xf32>, vector<16x64xf32> -> vector<16x64xf32>
    %c2_40 = arith.constant 2 : index
    %c0_41 = arith.constant 0 : index
    %c0_42 = arith.constant 0 : index
    %35 = vector.load %arg5[%c2_40, %c0_41, %c0_42] : memref<4x16x1xf32, #tpu.memory_space<vmem>>, vector<1x16x1xf32>
    %36 = vector.shape_cast %35 : vector<1x16x1xf32> to vector<16x1xf32>
    %37 = vector.broadcast %36 : vector<16x1xf32> to vector<16x64xf32>
    %38 = arith.addf %34, %37 : vector<16x64xf32>
    %c0_43 = arith.constant 0 : index
    %c128_44 = arith.constant 128 : index
    %39 = vector.load %arg10[%c0_43, %c128_44] : memref<16x256xf32, #tpu.memory_space<vmem>>, vector<16x64xf32>
    tpu.vector_store %arg10[%c0_43, %c128_44], %38 {strides = array<i32>} : memref<16x256xf32, #tpu.memory_space<vmem>>, vector<16x64xf32>,
    %c3_45 = arith.constant 3 : index
    %c0_46 = arith.constant 0 : index
    %c0_47 = arith.constant 0 : index
    %40 = vector.load %arg4[%c3_45, %c0_46, %c0_47] : memref<4x16x32xf32, #tpu.memory_space<vmem>>, vector<1x16x32xf32>
    %41 = vector.shape_cast %40 : vector<1x16x32xf32> to vector<16x32xf32>
    %cst_48 = arith.constant dense<0.000000e+00> : vector<16x64xf32>
    %42 = tpu.matmul %41, %15, %cst_48 {dimension_numbers = #tpu.dot_dimension_numbers<[1], [1], [0], [0], [0, 0, 1, 0], [], []>} : vector<16x32xf32>, vector<64x32xf32>, vector<16x64xf32> -> vector<16x64xf32>
    %c3_49 = arith.constant 3 : index
    %c0_50 = arith.constant 0 : index
    %c0_51 = arith.constant 0 : index
    %43 = vector.load %arg5[%c3_49, %c0_50, %c0_51] : memref<4x16x1xf32, #tpu.memory_space<vmem>>, vector<1x16x1xf32>
    %44 = vector.shape_cast %43 : vector<1x16x1xf32> to vector<16x1xf32>
    %45 = vector.broadcast %44 : vector<16x1xf32> to vector<16x64xf32>
    %46 = arith.addf %42, %45 : vector<16x64xf32>
    %c0_52 = arith.constant 0 : index
    %c192_53 = arith.constant 192 : index
    %47 = vector.load %arg10[%c0_52, %c192_53] : memref<16x256xf32, #tpu.memory_space<vmem>>, vector<16x64xf32>
    tpu.vector_store %arg10[%c0_52, %c192_53], %46 {strides = array<i32>} : memref<16x256xf32, #tpu.memory_space<vmem>>, vector<16x64xf32>,
    %c0_54 = arith.constant 0 : index
    %c0_55 = arith.constant 0 : index
    %48 = vector.load %arg9[%c0_54, %c0_55] : memref<256x256xf32, #tpu.memory_space<vmem>>, vector<256x256xf32>
    %c0_56 = arith.constant 0 : index
    %c0_57 = arith.constant 0 : index
    %49 = vector.load %arg10[%c0_56, %c0_57] : memref<16x256xf32, #tpu.memory_space<vmem>>, vector<16x256xf32>
    %c0_58 = arith.constant 0 : index
    %c0_59 = arith.constant 0 : index
    %50 = vector.load %arg3[%c0_58, %c0_59] : memref<6x256xf32, #tpu.memory_space<vmem>>, vector<1x256xf32>
    %51 = vector.broadcast %50 : vector<1x256xf32> to vector<16x256xf32>
    %52 = arith.mulf %49, %51 : vector<16x256xf32>
    %cst_60 = arith.constant dense<0.000000e+00> : vector<16x256xf32>
    %53 = tpu.matmul %49, %48, %cst_60 {dimension_numbers = #tpu.dot_dimension_numbers<[1], [0], [0], [1], [0, 0, 1, 1], [], []>} : vector<16x256xf32>, vector<256x256xf32>, vector<16x256xf32> -> vector<16x256xf32>
    %c1_61 = arith.constant 1 : index
    %c0_62 = arith.constant 0 : index
    %54 = vector.load %arg3[%c1_61, %c0_62] : memref<6x256xf32, #tpu.memory_space<vmem>>, vector<1x256xf32>
    %55 = vector.broadcast %54 : vector<1x256xf32> to vector<16x256xf32>
    %56 = arith.mulf %55, %53 : vector<16x256xf32>
    %57 = arith.addf %52, %56 : vector<16x256xf32>
    %cst_63 = arith.constant dense<0.000000e+00> : vector<16x256xf32>
    %58 = tpu.matmul %53, %48, %cst_63 {dimension_numbers = #tpu.dot_dimension_numbers<[1], [0], [0], [1], [0, 0, 1, 1], [], []>} : vector<16x256xf32>, vector<256x256xf32>, vector<16x256xf32> -> vector<16x256xf32>
    %c2_64 = arith.constant 2 : index
    %c0_65 = arith.constant 0 : index
    %59 = vector.load %arg3[%c2_64, %c0_65] : memref<6x256xf32, #tpu.memory_space<vmem>>, vector<1x256xf32>
    %60 = vector.broadcast %59 : vector<1x256xf32> to vector<16x256xf32>
    %61 = arith.mulf %60, %58 : vector<16x256xf32>
    %62 = arith.addf %57, %61 : vector<16x256xf32>
    %cst_66 = arith.constant dense<0.000000e+00> : vector<16x256xf32>
    %63 = tpu.matmul %58, %48, %cst_66 {dimension_numbers = #tpu.dot_dimension_numbers<[1], [0], [0], [1], [0, 0, 1, 1], [], []>} : vector<16x256xf32>, vector<256x256xf32>, vector<16x256xf32> -> vector<16x256xf32>
    %c3_67 = arith.constant 3 : index
    %c0_68 = arith.constant 0 : index
    %64 = vector.load %arg3[%c3_67, %c0_68] : memref<6x256xf32, #tpu.memory_space<vmem>>, vector<1x256xf32>
    %65 = vector.broadcast %64 : vector<1x256xf32> to vector<16x256xf32>
    %66 = arith.mulf %65, %63 : vector<16x256xf32>
    %67 = arith.addf %62, %66 : vector<16x256xf32>
    %cst_69 = arith.constant dense<0.000000e+00> : vector<16x256xf32>
    %68 = tpu.matmul %63, %48, %cst_69 {dimension_numbers = #tpu.dot_dimension_numbers<[1], [0], [0], [1], [0, 0, 1, 1], [], []>} : vector<16x256xf32>, vector<256x256xf32>, vector<16x256xf32> -> vector<16x256xf32>
    %c4 = arith.constant 4 : index
    %c0_70 = arith.constant 0 : index
    %69 = vector.load %arg3[%c4, %c0_70] : memref<6x256xf32, #tpu.memory_space<vmem>>, vector<1x256xf32>
    %70 = vector.broadcast %69 : vector<1x256xf32> to vector<16x256xf32>
    %71 = arith.mulf %70, %68 : vector<16x256xf32>
    %72 = arith.addf %67, %71 : vector<16x256xf32>
    %cst_71 = arith.constant dense<0.000000e+00> : vector<16x256xf32>
    %73 = tpu.matmul %68, %48, %cst_71 {dimension_numbers = #tpu.dot_dimension_numbers<[1], [0], [0], [1], [0, 0, 1, 1], [], []>} : vector<16x256xf32>, vector<256x256xf32>, vector<16x256xf32> -> vector<16x256xf32>
    %c5 = arith.constant 5 : index
    %c0_72 = arith.constant 0 : index
    %74 = vector.load %arg3[%c5, %c0_72] : memref<6x256xf32, #tpu.memory_space<vmem>>, vector<1x256xf32>
    %75 = vector.broadcast %74 : vector<1x256xf32> to vector<16x256xf32>
    %76 = arith.mulf %75, %73 : vector<16x256xf32>
    %77 = arith.addf %72, %76 : vector<16x256xf32>
    %cst_73 = arith.constant 0.000000e+00 : f32
    %78 = vector.broadcast %cst_73 : f32 to vector<64x4xf32>
    %c0_74 = arith.constant 0 : index
    %c0_75 = arith.constant 0 : index
    %79 = vector.load %arg7[%c0_74, %c0_75] : memref<1x4xf32, #tpu.memory_space<vmem>>, vector<1x4xf32>
    %80 = vector.broadcast %79 : vector<1x4xf32> to vector<64x4xf32>
    %81 = arith.addf %78, %80 : vector<64x4xf32>
    %82 = vector.extract_strided_slice %77 {offsets = [0, 0], sizes = [16, 64], strides = [1, 1]} : vector<16x256xf32> to vector<16x64xf32>
    %c0_76 = arith.constant 0 : index
    %c0_77 = arith.constant 0 : index
    %c0_78 = arith.constant 0 : index
    %83 = vector.load %arg6[%c0_76, %c0_77, %c0_78] : memref<4x16x4xf32, #tpu.memory_space<vmem>>, vector<1x16x4xf32>
    %84 = vector.shape_cast %83 : vector<1x16x4xf32> to vector<16x4xf32>
    %cst_79 = arith.constant dense<0.000000e+00> : vector<64x4xf32>
    %85 = tpu.matmul %82, %84, %cst_79 {dimension_numbers = #tpu.dot_dimension_numbers<[0], [0], [1], [1], [0, 1, 1, 1], [], []>} : vector<16x64xf32>, vector<16x4xf32>, vector<64x4xf32> -> vector<64x4xf32>
    %86 = arith.addf %81, %85 : vector<64x4xf32>
    %87 = vector.extract_strided_slice %77 {offsets = [0, 64], sizes = [16, 64], strides = [1, 1]} : vector<16x256xf32> to vector<16x64xf32>
    %c1_80 = arith.constant 1 : index
    %c0_81 = arith.constant 0 : index
    %c0_82 = arith.constant 0 : index
    %88 = vector.load %arg6[%c1_80, %c0_81, %c0_82] : memref<4x16x4xf32, #tpu.memory_space<vmem>>, vector<1x16x4xf32>
    %89 = vector.shape_cast %88 : vector<1x16x4xf32> to vector<16x4xf32>
    %cst_83 = arith.constant dense<0.000000e+00> : vector<64x4xf32>
    %90 = tpu.matmul %87, %89, %cst_83 {dimension_numbers = #tpu.dot_dimension_numbers<[0], [0], [1], [1], [0, 1, 1, 1], [], []>} : vector<16x64xf32>, vector<16x4xf32>, vector<64x4xf32> -> vector<64x4xf32>
    %91 = arith.addf %86, %90 : vector<64x4xf32>
    %92 = vector.extract_strided_slice %77 {offsets = [0, 128], sizes = [16, 64], strides = [1, 1]} : vector<16x256xf32> to vector<16x64xf32>
    %c2_84 = arith.constant 2 : index
    %c0_85 = arith.constant 0 : index
    %c0_86 = arith.constant 0 : index
    %93 = vector.load %arg6[%c2_84, %c0_85, %c0_86] : memref<4x16x4xf32, #tpu.memory_space<vmem>>, vector<1x16x4xf32>
    %94 = vector.shape_cast %93 : vector<1x16x4xf32> to vector<16x4xf32>
    %cst_87 = arith.constant dense<0.000000e+00> : vector<64x4xf32>
    %95 = tpu.matmul %92, %94, %cst_87 {dimension_numbers = #tpu.dot_dimension_numbers<[0], [0], [1], [1], [0, 1, 1, 1], [], []>} : vector<16x64xf32>, vector<16x4xf32>, vector<64x4xf32> -> vector<64x4xf32>
    %96 = arith.addf %91, %95 : vector<64x4xf32>
    %97 = vector.extract_strided_slice %77 {offsets = [0, 192], sizes = [16, 64], strides = [1, 1]} : vector<16x256xf32> to vector<16x64xf32>
    %c3_88 = arith.constant 3 : index
    %c0_89 = arith.constant 0 : index
    %c0_90 = arith.constant 0 : index
    %98 = vector.load %arg6[%c3_88, %c0_89, %c0_90] : memref<4x16x4xf32, #tpu.memory_space<vmem>>, vector<1x16x4xf32>
    %99 = vector.shape_cast %98 : vector<1x16x4xf32> to vector<16x4xf32>
    %cst_91 = arith.constant dense<0.000000e+00> : vector<64x4xf32>
    %100 = tpu.matmul %97, %99, %cst_91 {dimension_numbers = #tpu.dot_dimension_numbers<[0], [0], [1], [1], [0, 1, 1, 1], [], []>} : vector<16x64xf32>, vector<16x4xf32>, vector<64x4xf32> -> vector<64x4xf32>
    %101 = arith.addf %96, %100 : vector<64x4xf32>
    %cst_92 = arith.constant dense<0xFF800000> : vector<64xf32>
    %102 = vector.multi_reduction <maximumf>, %101, %cst_92 [1] : vector<64x4xf32> to vector<64xf32>
    %103 = vector.shape_cast %102 : vector<64xf32> to vector<64x1xf32>
    %104 = vector.broadcast %103 : vector<64x1xf32> to vector<64x4xf32>
    %105 = arith.subf %101, %104 : vector<64x4xf32>
    %106 = math.exp %105 : vector<64x4xf32>
    %cst_93 = arith.constant dense<0.000000e+00> : vector<64xf32>
    %107 = vector.multi_reduction <add>, %106, %cst_93 [1] : vector<64x4xf32> to vector<64xf32>
    %108 = vector.shape_cast %107 : vector<64xf32> to vector<64x1xf32>
    %109 = math.log %108 : vector<64x1xf32>
    %110 = vector.broadcast %109 : vector<64x1xf32> to vector<64x4xf32>
    %111 = arith.subf %105, %110 : vector<64x4xf32>
    %c0_94 = arith.constant 0 : index
    %c0_95 = arith.constant 0 : index
    %c0_96 = arith.constant 0 : index
    %112 = vector.load %arg8[%c0_94, %c0_95, %c0_96] : memref<1x64x4xf32, #tpu.memory_space<vmem>>, vector<1x64x4xf32>
    %113 = vector.shape_cast %112 : vector<1x64x4xf32> to vector<64x4xf32>
    %114 = vector.shape_cast %111 : vector<64x4xf32> to vector<1x64x4xf32>
    tpu.vector_store %arg8[%c0_94, %c0_95, %c0_96], %114 {strides = array<i32>} : memref<1x64x4xf32, #tpu.memory_space<vmem>>, vector<1x64x4xf32>,
    return
  }
  func.func @transform_0(%arg0: i32) -> (i32, i32, i32) {
    %c0_i32 = arith.constant 0 : i32
    %c0_i32_0 = arith.constant 0 : i32
    %c0_i32_1 = arith.constant 0 : i32
    return %arg0, %c0_i32, %c0_i32_0 : i32, i32, i32
  }
  func.func @transform_1(%arg0: i32) -> (i32, i32, i32) {
    %c0_i32 = arith.constant 0 : i32
    %c0_i32_0 = arith.constant 0 : i32
    %c0_i32_1 = arith.constant 0 : i32
    %c0_i32_2 = arith.constant 0 : i32
    return %c0_i32, %c0_i32_0, %c0_i32_1 : i32, i32, i32
  }
  func.func @transform_2(%arg0: i32) -> (i32, i32) {
    %c0_i32 = arith.constant 0 : i32
    %c0_i32_0 = arith.constant 0 : i32
    %c0_i32_1 = arith.constant 0 : i32
    return %c0_i32, %c0_i32_0 : i32, i32
  }
  func.func @transform_3(%arg0: i32) -> (i32, i32, i32) {
    %c0_i32 = arith.constant 0 : i32
    %c0_i32_0 = arith.constant 0 : i32
    %c0_i32_1 = arith.constant 0 : i32
    %c0_i32_2 = arith.constant 0 : i32
    return %c0_i32, %c0_i32_0, %c0_i32_1 : i32, i32, i32
  }
  func.func @transform_4(%arg0: i32) -> (i32, i32, i32) {
    %c0_i32 = arith.constant 0 : i32
    %c0_i32_0 = arith.constant 0 : i32
    %c0_i32_1 = arith.constant 0 : i32
    %c0_i32_2 = arith.constant 0 : i32
    return %c0_i32, %c0_i32_0, %c0_i32_1 : i32, i32, i32
  }
  func.func @transform_5(%arg0: i32) -> (i32, i32, i32) {
    %c0_i32 = arith.constant 0 : i32
    %c0_i32_0 = arith.constant 0 : i32
    %c0_i32_1 = arith.constant 0 : i32
    %c0_i32_2 = arith.constant 0 : i32
    return %c0_i32, %c0_i32_0, %c0_i32_1 : i32, i32, i32
  }
  func.func @transform_6(%arg0: i32) -> (i32, i32) {
    %c0_i32 = arith.constant 0 : i32
    %c0_i32_0 = arith.constant 0 : i32
    %c0_i32_1 = arith.constant 0 : i32
    return %c0_i32, %c0_i32_0 : i32, i32
  }
  func.func @transform_7(%arg0: i32) -> (i32, i32, i32) {
    %c0_i32 = arith.constant 0 : i32
    %c0_i32_0 = arith.constant 0 : i32
    %c0_i32_1 = arith.constant 0 : i32
    return %arg0, %c0_i32, %c0_i32_0 : i32, i32, i32
  }
}

</mosaic_0001>

<bundles_post_ra>
// kernel: tpu_custom_call.1
= control target key start
LH: loop header
LB: loop body
LE: loop exit
PB: predicated region body
PF: predicated region fallthrough
CT: control target
= control target key end

     0   :  { %12 = vsyncpa [#allocation5], 0  ;;  %s3345_s24 = smov 0   ;;  %s4085_s0 = inlined_call_operand.vmem [shape: f32[2,64,32], index: 0, kind: input, shape index: {}]   ;;  %s4086_s1 = inlined_call_operand.vmem [shape: f32[4,64,64], index: 1, kind: input, shape index: {}]   ;;  %s4087_s2 = inlined_call_operand.hbm [shape: f32[6,256], index: 2, kind: input, shape index: {}]   ;;  %s4088_s3 = inlined_call_operand.vmem [shape: f32[4,16,32], index: 3, kind: input, shape index: {}]   ;;  %s4089_s4 = inlined_call_operand.vmem [shape: f32[4,16,1], index: 4, kind: input, shape index: {}]   ;;  %s4090_s5 = inlined_call_operand.vmem [shape: f32[4,16,4], index: 5, kind: input, shape index: {}]   ;;  %s4091_s6 = inlined_call_operand.vmem [shape: f32[1,4], index: 6, kind: input, shape index: {}]   ;;  %s4092_s7 = inlined_call_operand.vmem [shape: f32[2,64,4], index: 7, kind: output, shape index: {}]  }
   0x1 LB: > { %s3351_s25 = sadd.s32 4294967295, %s3298_s24   ;;  %p2392_p0 = scmp.ge.s32.totalorder %s3298_s24, 1  ;;  %s3298_s24 = sphi %s3345_s24, %s18_s24  }
   0x2   : > { %p201_p1 = scmp.lt.s32.totalorder %s3298_s24, 3  ;;  %p4093_p3 = scmp.eq.s32.totalorder %s3351_s25, 0 }
   0x3   : > { %s3300_s27 = smov [#allocation4]   ;;  %s3260_s9 = scalar_lea.hbm %s4087_s2, 256 }
   0x4   : > { %p3355_p2 = pnand %p2392_p0, %p201_p1  ;;  %s217_s28 = sshll.u32 %s3300_s27, 4  ;;  %s218_s28 = int_to_ptr.vmem [resolvable:$true] %s217_s28 }
   0x5   : > { %p3261_p6 = scmp.ne.s32.totalorder %s4087_s2, %s3260_s9  ;;  %p3267_p10 = scmp.lt.u32.totalorder %s3260_s9, %s4087_s2 }
   0x6   : > { %s4095_s26 = scalar_select %p3355_p2, 1, 0 }
   0x7   : > { %p3208_p4 = pneg %p3355_p2 }
   0x9   : > { %p3364_p5 = pnand %p4093_p3, %p3208_p4 }
   0xb   : > { %p3262_p7 = pneg %p3364_p5 }
   0xd   : > { %p3263_p8 = pnand %p3262_p7, %p3261_p6 }
   0xf   : > { %p3264_p9 = pneg %p3263_p8 }
  0x11   : > { %p3269_p11 = pnand %p3267_p10, %p3264_p9 }
  0x13   : > { %3272 = shalt.err (!%p3269_p11)
}
  0x14   : > { %s3273_s14 = scalar_lea.vmem %s218_s28, 256  ;;  %p3281_p1 = scmp.lt.s32.totalorder %s218_s28, %s218_s28 }
  0x15   : > { %p3274_p12 = scmp.ne.s32.totalorder %s218_s28, %s3273_s14  ;;  %p3282_p4 = scmp.lt.s32.totalorder %s3273_s14, %s3273_s14 }
  0x17   : > { %p3276_p13 = pnand %p3274_p12, %p3262_p7  ;;  %p3283_p3 = por %p3282_p4, %p3281_p1 }
  0x19   : > { %p3277_p0 = pneg %p3276_p13 }
  0x1b   : > { %p3284_p2 = pnand %p3283_p3, %p3277_p0 }
  0x1d   : > { %3287 = shalt.err (!%p3284_p2)
}
  0x1e   : > { %3211 = dma.hbm_to_vmem [thread:$0]  (!%p3364_p5), %s4087_s2, 256, %s218_s28, [#allocation5]  }
  0x1f   : > { %p4097_p6 = scmp.ne.s32.totalorder %s4095_s26, 0 }
  0x20   : > { %p4098_p8 = scmp.eq.s32.totalorder (!%p4097_p6), %s3351_s25, 0 }
  0x21   : > { %250 = sbr.rel (%p4097_p6) target bundleno = 2365 (0x93d), region = 48 }
  0x28   : > { %3293 = dma.done.wait (%p4098_p8), [#allocation5], 256   ;;  %p4099_p7 = pmov %p4098_p8 }
  0x29   : > { %p282_p9 = scmp.lt.s32.totalorder %s3351_s25, 1  ;;  %v3301_v0 = vmov 0   ;;  %vm511_vm0 = vcmask 261120   ;;  %v2435_v8 = vld [vmem:[%s4088_s3 + $0x10] sm:$0xff]  ;;  %v497_v9 = vld [vmem:[%s4088_s3] sm:$0xff]  ;;  %v2466_v10 = vld [vmem:[%s4089_s4 + $0x38] sm:$0xff] }
  0x2a   : > { %3295 = vsyncadd (%p4099_p7), [#allocation5], 4294967040  ;;  %3227 = vset.pattern.permute.xlu1 %v3301_v0  ;;  %3226 = vset.pattern.permute.xlu0 %v3301_v0  ;;  %v2465_v11 = vld [vmem:[%s4089_s4 + $0x30] sm:$0xff]  ;;  %v2438_v14 = vld [vmem:[%s4089_s4 + $0x18] sm:$0xff]  ;;  %v3302_v17 = vmov 0.0   ;;  %s3303_s16 = smov 64  }
  0x2b   : > { %s4103_s25 = smov (!%p282_p9, %s3351_s25), 1  ;;  %vm3404_vm1 = vmpackc.low %vm511_vm0, %vm511_vm0  ;;  %2635 = vmatprep.mubr.msk.f32.mxu1 %vm511_vm0, %v2435_v8  ;;  %2616 = vmatprep.mubr.msk.f32.mxu0 %vm511_vm0, %v497_v9  ;;  %v2437_v15 = vld [vmem:[%s4089_s4 + $0x10] sm:$0xff]  ;;  %310 = vst [vmem:[#allocation2 + $0x90] sm:$0xff] %v3302_v17  ;;  %v2402_v18 = vld [vmem:[%s4086_s1 + $0x48] sm:$0xff]  ;;  %vm414_vm2 = vcmask 1048064   ;;  %vm364_vm3 = vcmask 523264  }
  0x2c   : > { %s2518_s17 = sshll.u32 %s4103_s25, 6  ;;  %838 = vperm.xlu1 %3227, %v2466_v10   ;;  %833 = vperm.xlu0 %3226, %v2465_v11   ;;  %292 = vst [vmem:[#allocation2] sm:$0xff] %v3302_v17  ;;  %294 = vst [vmem:[#allocation2 + $0x10] sm:$0xff] %v3302_v17  ;;  %v2401_v19 = vld [vmem:[%s4086_s1 + $0x40] sm:$0xff]  ;;  %v2404_v22 = vld [vmem:[%s4086_s1 + $0x58] sm:$0xff]  ;;  %vm1548_vm4 = vcmask 130048  }
  0x2d   : > { %s3400_s20 = scalar_lea.vmem %s4085_s0, %s2518_s17  ;;  %296 = vst [vmem:[#allocation2 + $0x20] sm:$0xff] %v3302_v17  ;;  %298 = vst [vmem:[#allocation2 + $0x30] sm:$0xff] %v3302_v17  ;;  %v2403_v23 = vld [vmem:[%s4086_s1 + $0x50] sm:$0xff]  ;;  %v2406_v25 = vld [vmem:[%s4086_s1 + $0x68] sm:$0xff]  ;;  %vm2218_vm5 = vcmask 31744  }
  0x2e   : > { %v489_v2 = vld [vmem:[%s3400_s20] sm:$0xff]  ;;  %v490_v3 = vld [vmem:[%s3400_s20 + $0x8] sm:$0xff]  ;;  %v491_v4 = vld [vmem:[%s3400_s20 + $0x10] sm:$0xff]  ;;  %300 = vst [vmem:[#allocation2 + $0x40] sm:$0xff] %v3302_v17 }
  0x2f   : > { %v3411_v5 = vpack.c.bf16 %v490_v3, %v489_v2  ;;  %v492_v6 = vld [vmem:[%s3400_s20 + $0x18] sm:$0xff]  ;;  %v493_v12 = vld [vmem:[%s3400_s20 + $0x20] sm:$0xff]  ;;  %v494_v13 = vld [vmem:[%s3400_s20 + $0x28] sm:$0xff]  ;;  %302 = vst [vmem:[#allocation2 + $0x50] sm:$0xff] %v3302_v17  ;;  %v3304_v3 = vmov 0.0|0.0  }
  0x30   : > { %v3414_v7 = vpack.c.bf16 %v492_v6, %v491_v4  ;;  %v3456_v16 = vpack.c.bf16 %v494_v13, %v493_v12  ;;  %632 = vperm.xlu1 %3227, %v2438_v14   ;;  %627 = vperm.xlu0 %3226, %v2437_v15   ;;  %304 = vst [vmem:[#allocation2 + $0x60] sm:$0xff] %v3302_v17  ;;  %306 = vst [vmem:[#allocation2 + $0x70] sm:$0xff] %v3302_v17  ;;  %v495_v20 = vld [vmem:[%s3400_s20 + $0x30] sm:$0xff]  ;;  %v496_v21 = vld [vmem:[%s3400_s20 + $0x38] sm:$0xff]  ;;  %s4056_s20 = scalar_lea.vmem %s4092_s7, %s2518_s17 }
  0x31   : > { %2742 = vmatprep.subr.msk.bf16.mxu0 %vm3404_vm1, %v3411_v5  ;;  %2766 = vmatprep.subr.msk.bf16.mxu1 %vm3404_vm1, %v3411_v5  ;;  %308 = vst [vmem:[#allocation2 + $0x80] sm:$0xff] %v3302_v17  ;;  %312 = vst [vmem:[#allocation2 + $0xa0] sm:$0xff] %v3302_v17  ;;  %v2758_v24 = vpack.c.bf16 %v496_v21, %v495_v20  ;;  %v2405_v26 = vld [vmem:[%s4086_s1 + $0x60] sm:$0xff]  ;;  %v2408_v27 = vld [vmem:[%s4086_s1 + $0x78] sm:$0xff] }
  0x32   : > { %2745 = vmatpush3.bf16.xpose.msk.msra.mxu0 %vm3404_vm1, %v3411_v5  ;;  %2769 = vmatpush3.bf16.xpose.msk.msra.mxu1 %vm3404_vm1, %v3411_v5  ;;  %314 = vst [vmem:[#allocation2 + $0xb0] sm:$0xff] %v3302_v17  ;;  %316 = vst [vmem:[#allocation2 + $0xc0] sm:$0xff] %v3302_v17  ;;  %v2407_v28 = vld [vmem:[%s4086_s1 + $0x70] sm:$0xff]  ;;  %v2418_v29 = vld [vmem:[%s4086_s1 + $0xc8] sm:$0xff] }
  0x33   : > { %2748 = vmatprep.subr.msk.bf16.mxu0 %vm3404_vm1, %v3414_v7  ;;  %2772 = vmatprep.subr.msk.bf16.mxu1 %vm3404_vm1, %v3414_v7  ;;  %318 = vst [vmem:[#allocation2 + $0xd0] sm:$0xff] %v3302_v17  ;;  %320 = vst [vmem:[#allocation2 + $0xe0] sm:$0xff] %v3302_v17  ;;  %v2417_v30 = vld [vmem:[%s4086_s1 + $0xc0] sm:$0xff]  ;;  %v2436_v31 = vld [vmem:[%s4088_s3 + $0x18] sm:$0xff] }
  0x34   : > { %322 = vst [vmem:[#allocation2 + $0xf0] sm:$0xff] %v3302_v17  ;;  %325 = vst [vmem:[#allocation2 + $0x108] sm:$0xff] %v3302_v17  ;;  %392 = vrot.lane.b32.xlu1 %v2402_v18, %s3303_s16  ;;  %390 = vrot.lane.b32.xlu0 %v2401_v19, %s3303_s16  ;;  %v498_v32 = vld [vmem:[%s4088_s3 + $0x8] sm:$0xff]  ;;  %v2449_v33 = vld [vmem:[%s4088_s3 + $0x20] sm:$0xff] }
  0x35   : > { %327 = vst [vmem:[#allocation2 + $0x118] sm:$0xff] %v3302_v17  ;;  %329 = vst [vmem:[#allocation2 + $0x128] sm:$0xff] %v3302_v17  ;;  %v2463_v34 = vld [vmem:[%s4088_s3 + $0x30] sm:$0xff]  ;;  %v2420_v35 = vld [vmem:[%s4086_s1 + $0xd8] sm:$0xff] }
  0x36   : > { %331 = vst [vmem:[#allocation2 + $0x138] sm:$0xff] %v3302_v17  ;;  %333 = vst [vmem:[#allocation2 + $0x148] sm:$0xff] %v3302_v17  ;;  %v2419_v36 = vld [vmem:[%s4086_s1 + $0xd0] sm:$0xff]  ;;  %v2421_v37 = vld [vmem:[%s4086_s1 + $0xe0] sm:$0xff] }
  0x37   : > { %335 = vst [vmem:[#allocation2 + $0x158] sm:$0xff] %v3302_v17  ;;  %337 = vst [vmem:[#allocation2 + $0x168] sm:$0xff] %v3302_v17  ;;  %v2451_v38 = vld [vmem:[%s4089_s4 + $0x20] sm:$0xff]  ;;  %v2422_v40 = vld [vmem:[%s4086_s1 + $0xe8] sm:$0xff] }
  0x38   : > { %339 = vst [vmem:[#allocation2 + $0x178] sm:$0xff] %v3302_v17  ;;  %341 = vst [vmem:[#allocation2 + $0x188] sm:$0xff] %v3302_v17  ;;  %396 = vrot.lane.b32.xlu1 %v2404_v22, %s3303_s16  ;;  %394 = vrot.lane.b32.xlu0 %v2403_v23, %s3303_s16  ;;  %v499_v39 = vld [vmem:[%s4089_s4] sm:$0xff]  ;;  %v2423_v41 = vld [vmem:[%s4086_s1 + $0xf0] sm:$0xff] }
  0x39   : > { %343 = vst [vmem:[#allocation2 + $0x198] sm:$0xff] %v3302_v17  ;;  %345 = vst [vmem:[#allocation2 + $0x1a8] sm:$0xff] %v3302_v17  ;;  %v2452_v42 = vld [vmem:[%s4089_s4 + $0x28] sm:$0xff]  ;;  %v2464_v45 = vld [vmem:[%s4088_s3 + $0x38] sm:$0xff] }
  0x3a   : > { %347 = vst [vmem:[#allocation2 + $0x1b8] sm:$0xff] %v3302_v17  ;;  %349 = vst [vmem:[#allocation2 + $0x1c8] sm:$0xff] %v3302_v17  ;;  %2751 = vmatpush3.bf16.xpose.msk.msra.mxu0 %vm3404_vm1, %v3414_v7  ;;  %2775 = vmatpush3.bf16.xpose.msk.msra.mxu1 %vm3404_vm1, %v3414_v7  ;;  %v500_v43 = vld [vmem:[%s4089_s4 + $0x8] sm:$0xff]  ;;  %v2424_v46 = vld [vmem:[%s4086_s1 + $0xf8] sm:$0xff] }
  0x3b   : > { %351 = vst [vmem:[#allocation2 + $0x1d8] sm:$0xff] %v3302_v17  ;;  %353 = vst [vmem:[#allocation2 + $0x1e8] sm:$0xff] %v3302_v17  ;;  %2754 = vmatprep.subr.msk.bf16.mxu0 %vm3404_vm1, %v3456_v16  ;;  %2778 = vmatprep.subr.msk.bf16.mxu1 %vm3404_vm1, %v3456_v16  ;;  %v2450_v44 = vld [vmem:[%s4088_s3 + $0x28] sm:$0xff]  ;;  %v356_v61 = vld [vmem:[%s4086_s1] sm:$0xff] }
  0x3c   : > { %355 = vst [vmem:[#allocation2 + $0x1f8] sm:$0xff] %v3302_v17  ;;  %400 = vrot.lane.b32.xlu1 %v2406_v25, %s3303_s16  ;;  %398 = vrot.lane.b32.xlu0 %v2405_v26, %s3303_s16  ;;  %v357_v62 = vld [vmem:[%s4086_s1 + $0x8] sm:$0xff]  ;;  %v358_v63 = vld [vmem:[%s4086_s1 + $0x10] sm:$0xff]  ;;  %365 = vst.msk [vmem:[#allocation2] sm:$0xff] %vm364_vm3, %v356_v61 }
  0x3d   : > { %366 = vst.msk [vmem:[#allocation2 + $0x10] sm:$0xff] %vm364_vm3, %v357_v62  ;;  %v359_v0 = vld [vmem:[%s4086_s1 + $0x18] sm:$0xff]  ;;  %367 = vst.msk [vmem:[#allocation2 + $0x20] sm:$0xff] %vm364_vm3, %v358_v63  ;;  %v360_v1 = vld [vmem:[%s4086_s1 + $0x20] sm:$0xff] }
  0x3e   : > { %v361_v2 = vld [vmem:[%s4086_s1 + $0x28] sm:$0xff]  ;;  %368 = vst.msk [vmem:[#allocation2 + $0x30] sm:$0xff] %vm364_vm3, %v359_v0  ;;  %369 = vst.msk [vmem:[#allocation2 + $0x40] sm:$0xff] %vm364_vm3, %v360_v1  ;;  %v362_v4 = vld [vmem:[%s4086_s1 + $0x30] sm:$0xff] }
  0x3f   : > { %370 = vst.msk [vmem:[#allocation2 + $0x50] sm:$0xff] %vm364_vm3, %v361_v2  ;;  %371 = vst.msk [vmem:[#allocation2 + $0x60] sm:$0xff] %vm364_vm3, %v362_v4  ;;  %v2409_v8 = vld [vmem:[%s4086_s1 + $0x80] sm:$0xff]  ;;  %v2410_v9 = vld [vmem:[%s4086_s1 + $0x88] sm:$0xff] }
  0x40   : > { %404 = vrot.lane.b32.xlu1 %v2408_v27, %s3303_s16  ;;  %402 = vrot.lane.b32.xlu0 %v2407_v28, %s3303_s16  ;;  %432 = vst.msk [vmem:[#allocation2 + $0x108] sm:$0xff] %vm364_vm3, %v2409_v8  ;;  %433 = vst.msk [vmem:[#allocation2 + $0x118] sm:$0xff] %vm364_vm3, %v2410_v9  ;;  %v2411_v10 = vld [vmem:[%s4086_s1 + $0x90] sm:$0xff]  ;;  %v2412_v11 = vld [vmem:[%s4086_s1 + $0x98] sm:$0xff] }
  0x41   : > { %v2413_v12 = vld [vmem:[%s4086_s1 + $0xa0] sm:$0xff]  ;;  %434 = vst.msk [vmem:[#allocation2 + $0x128] sm:$0xff] %vm364_vm3, %v2411_v10  ;;  %435 = vst.msk [vmem:[#allocation2 + $0x138] sm:$0xff] %vm364_vm3, %v2412_v11  ;;  %v2414_v13 = vld [vmem:[%s4086_s1 + $0xa8] sm:$0xff] }
  0x42   : > { %2757 = vmatpush3.bf16.xpose.msk.msra.mxu0 %vm3404_vm1, %v3456_v16  ;;  %2781 = vmatpush3.bf16.xpose.msk.msra.mxu1 %vm3404_vm1, %v3456_v16  ;;  %436 = vst.msk [vmem:[#allocation2 + $0x148] sm:$0xff] %vm364_vm3, %v2413_v12  ;;  %437 = vst.msk [vmem:[#allocation2 + $0x158] sm:$0xff] %vm364_vm3, %v2414_v13 }
  0x43   : > { %2760 = vmatprep.subr.msk.bf16.mxu0 %vm3404_vm1, %v2758_v24  ;;  %2784 = vmatprep.subr.msk.bf16.mxu1 %vm3404_vm1, %v2758_v24  ;;  %v932_v15 = vld [vmem:[#allocation2] sm:$0xff] }
  0x44   : > { %459 = vrot.lane.b32.xlu1 %v2418_v29, %s3303_s16  ;;  %457 = vrot.lane.b32.xlu0 %v2417_v30, %s3303_s16  ;;  %v936_v17 = vld [vmem:[#allocation2 + $0x20] sm:$0xff] }
  0x45   : > { %v938_v19 = vld [vmem:[#allocation2 + $0x30] sm:$0xff]  ;;  %v940_v22 = vld [vmem:[#allocation2 + $0x40] sm:$0xff] }
  0x46   : > { %v3713_v20 = vpack.c.bf16 %v938_v19, %v936_v17  ;;  %v942_v23 = vld [vmem:[#allocation2 + $0x50] sm:$0xff]  ;;  %v944_v27 = vld [vmem:[#allocation2 + $0x60] sm:$0xff] }
  0x48   : > { %463 = vrot.lane.b32.xlu1 %v2420_v35, %s3303_s16  ;;  %461 = vrot.lane.b32.xlu0 %v2419_v36, %s3303_s16 }
  0x4a   : > { %2763 = vmatpush3.bf16.xpose.msk.msra.mxu0 %vm3404_vm1, %v2758_v24  ;;  %2787 = vmatpush3.bf16.xpose.msk.msra.mxu1 %vm3404_vm1, %v2758_v24 }
  0x4b   : > { %2790 = vmatprep.subr.msk.bf16.mxu0 %vm3404_vm1, %v3411_v5  ;;  %2814 = vmatprep.subr.msk.bf16.mxu1 %vm3404_vm1, %v3411_v5 }
  0x4c   : > { %465 = vrot.lane.b32.xlu1 %v2421_v37, %s3303_s16  ;;  %734 = vperm.xlu0 %3226, %v2451_v38  }
  0x50   : > { %503 = vperm.xlu1 %3227, %v499_v39   ;;  %467 = vrot.lane.b32.xlu0 %v2422_v40, %s3303_s16 }
  0x51   : > { %2636 = vmatmul.mubr.msk.f32.vlgmr.msra.gmra.mrb[0].mxu1 %vm511_vm0, %v2436_v31  ;;  %2617 = vmatmul.mubr.msk.f32.vlgmr.msra.gmra.mrb[0].mxu0 %vm511_vm0, %v498_v32 }
  0x52   : > { %2793 = vmatpush3.bf16.xpose.msk.msra.mxu0 %vm3404_vm1, %v3411_v5  ;;  %2817 = vmatpush3.bf16.xpose.msk.msra.mxu1 %vm3404_vm1, %v3411_v5  ;;  %v363_v5 = vld [vmem:[%s4086_s1 + $0x38] sm:$0xff] }
  0x53   : > { %2796 = vmatprep.subr.msk.bf16.mxu0 %vm3404_vm1, %v3414_v7  ;;  %2820 = vmatprep.subr.msk.bf16.mxu1 %vm3404_vm1, %v3414_v7  ;;  %372 = vst.msk [vmem:[#allocation2 + $0x70] sm:$0xff] %vm364_vm3, %v363_v5 }
  0x54   : > { %2654 = vmatprep.mubr.msk.f32.mxu0 %vm511_vm0, %v2449_v33  ;;  %2673 = vmatprep.mubr.msk.f32.mxu1 %vm511_vm0, %v2463_v34 }
  0x55   : > { %469 = vrot.lane.b32.xlu1 %v2423_v41, %s3303_s16  ;;  %739 = vperm.xlu0 %3226, %v2452_v42   ;;  %v965_v42 = vld [vmem:[#allocation2 + $0x108] sm:$0xff] }
  0x59   : > { %508 = vperm.xlu1 %3227, %v500_v43   ;;  %471 = vrot.lane.b32.xlu0 %v2424_v46, %s3303_s16  ;;  %v967_v43 = vld [vmem:[#allocation2 + $0x118] sm:$0xff]  ;;  %v969_v46 = vld [vmem:[#allocation2 + $0x128] sm:$0xff] }
  0x5a   : > { %2799 = vmatpush3.bf16.xpose.msk.msra.mxu0 %vm3404_vm1, %v3414_v7  ;;  %2823 = vmatpush3.bf16.xpose.msk.msra.mxu1 %vm3404_vm1, %v3414_v7  ;;  %v946_v28 = vld [vmem:[#allocation2 + $0x70] sm:$0xff] }
  0x5b   : > { %2802 = vmatprep.subr.msk.bf16.mxu0 %vm3404_vm1, %v3456_v16  ;;  %2826 = vmatprep.subr.msk.bf16.mxu1 %vm3404_vm1, %v3456_v16  ;;  %v3730_v29 = vpack.c.bf16 %v946_v28, %v944_v27 }
  0x62   : > { %2805 = vmatpush3.bf16.xpose.msk.msra.mxu0 %vm3404_vm1, %v3456_v16  ;;  %2829 = vmatpush3.bf16.xpose.msk.msra.mxu1 %vm3404_vm1, %v3456_v16  ;;  %v934_v16 = vld [vmem:[#allocation2 + $0x10] sm:$0xff] }
  0x63   : > { %2808 = vmatprep.subr.msk.bf16.mxu0 %vm3404_vm1, %v2758_v24  ;;  %2832 = vmatprep.subr.msk.bf16.mxu1 %vm3404_vm1, %v2758_v24  ;;  %v3709_v18 = vpack.c.bf16 %v934_v16, %v932_v15 }
  0x6a   : > { %2811 = vmatpush3.bf16.xpose.msk.msra.mxu0 %vm3404_vm1, %v2758_v24  ;;  %2835 = vmatpush3.bf16.xpose.msk.msra.mxu1 %vm3404_vm1, %v2758_v24  ;;  %v3721_v24 = vpack.c.bf16 %v942_v23, %v940_v22 }
  0x6b   : > { %2837 = vmatprep.subr.bf16.mxu0 %v3304_v3  ;;  %2901 = vmatprep.subr.bf16.mxu1 %v3304_v3 }
  0x71   : > { %2655 = vmatmul.mubr.msk.f32.vlgmr.msra.gmra.mrb[2].mxu0 %vm511_vm0, %v2450_v44  ;;  %2674 = vmatmul.mubr.msk.f32.vlgmr.msra.gmra.mrb[2].mxu1 %vm511_vm0, %v2464_v45  ;;  %v3759_v45 = vpack.c.bf16 %v967_v43, %v965_v42  ;;  %v1000_v42 = vld [vmem:[#allocation4] ss:$8 sm:$0x3] }
  0x72   : > { %2839 = vmatpush1.bf16.msra.mxu0 %v3709_v18  ;;  %2903 = vmatpush1.bf16.msra.mxu1 %v3709_v18 }
  0x73   : > { %2841 = vmatprep.subr.bf16.mxu0 %v3304_v3  ;;  %2905 = vmatprep.subr.bf16.mxu1 %v3304_v3 }
  0x76   : > { %2843 = vmatpush1.bf16.msra.mxu0 %v3713_v20  ;;  %2907 = vmatpush1.bf16.msra.mxu1 %v3713_v20 }
  0x77   : > { %2845 = vmatprep.subr.bf16.mxu0 %v3304_v3  ;;  %2909 = vmatprep.subr.bf16.mxu1 %v3304_v3 }
  0x7a   : > { %2847 = vmatpush1.bf16.msra.mxu0 %v3721_v24  ;;  %2911 = vmatpush1.bf16.msra.mxu1 %v3721_v24 }
  0x7b   : > { %2849 = vmatprep.subr.bf16.mxu0 %v3304_v3  ;;  %2913 = vmatprep.subr.bf16.mxu1 %v3304_v3 }
  0x7e   : > { %2851 = vmatpush1.bf16.msra.mxu0 %v3730_v29  ;;  %2915 = vmatpush1.bf16.msra.mxu1 %v3730_v29 }
  0x7f   : > { %2853 = vmatprep.subr.bf16.mxu0 %v3304_v3  ;;  %2917 = vmatprep.subr.bf16.mxu1 %v3304_v3 }
  0xab   : > { %v3630_v47 = vpop.permute.xlu1 %838  ;;  %v3632_v48 = vpop.permute.xlu0 %833 }
  0xaf   : > { %v3634_v49 = vpop.permute.xlu1 %632  ;;  %v3636_v50 = vpop.permute.xlu0 %627 }
  0xb3   : > { %v393_v51 = vpop.permute.xlu1 %392  ;;  %v391_v52 = vpop.permute.xlu0 %390 }
  0xb4   : > { %416 = vst.msk [vmem:[#allocation2 + $0x90] sm:$0xff] %vm414_vm2, %v393_v51  ;;  %415 = vst.msk [vmem:[#allocation2 + $0x80] sm:$0xff] %vm414_vm2, %v391_v52  ;;  %v971_v51 = vld [vmem:[#allocation2 + $0x138] sm:$0xff] }
  0xb5   : > { %v3765_v52 = vpack.c.bf16 %v971_v51, %v969_v46  ;;  %v1094_v51 = vld [vmem:[#allocation4 + $0x1] ss:$8 sm:$0x3] }
  0xb7   : > { %v397_v53 = vpop.permute.xlu1 %396  ;;  %v395_v54 = vpop.permute.xlu0 %394 }
  0xb8   : > { %418 = vst.msk [vmem:[#allocation2 + $0xb0] sm:$0xff] %vm414_vm2, %v397_v53  ;;  %417 = vst.msk [vmem:[#allocation2 + $0xa0] sm:$0xff] %vm414_vm2, %v395_v54  ;;  %v973_v53 = vld [vmem:[#allocation2 + $0x148] sm:$0xff]  ;;  %v975_v54 = vld [vmem:[#allocation2 + $0x158] sm:$0xff] }
  0xbb   : > { %v401_v55 = vpop.permute.xlu1 %400  ;;  %v399_v56 = vpop.permute.xlu0 %398  ;;  %v948_v31 = vld [vmem:[#allocation2 + $0x80] sm:$0xff]  ;;  %v950_v32 = vld [vmem:[#allocation2 + $0x90] sm:$0xff] }
  0xbc   : > { %420 = vst.msk [vmem:[#allocation2 + $0xd0] sm:$0xff] %vm414_vm2, %v401_v55  ;;  %419 = vst.msk [vmem:[#allocation2 + $0xc0] sm:$0xff] %vm414_vm2, %v399_v56  ;;  %v3737_v33 = vpack.c.bf16 %v950_v32, %v948_v31  ;;  %v3771_v55 = vpack.c.bf16 %v975_v54, %v973_v53  ;;  %v2415_v56 = vld [vmem:[%s4086_s1 + $0xb0] sm:$0xff] }
  0xbd   : > { %438 = vst.msk [vmem:[#allocation2 + $0x168] sm:$0xff] %vm364_vm3, %v2415_v56 }
  0xbe   : > { %2855 = vmatpush1.bf16.msra.mxu0 %v3737_v33  ;;  %2919 = vmatpush1.bf16.msra.mxu1 %v3737_v33 }
  0xbf   : > { %v405_v57 = vpop.permute.xlu1 %404  ;;  %v403_v58 = vpop.permute.xlu0 %402  ;;  %v952_v34 = vld [vmem:[#allocation2 + $0xa0] sm:$0xff]  ;;  %v954_v35 = vld [vmem:[#allocation2 + $0xb0] sm:$0xff]  ;;  %2857 = vmatprep.subr.bf16.mxu0 %v3304_v3  ;;  %2921 = vmatprep.subr.bf16.mxu1 %v3304_v3 }
  0xc0   : > { %422 = vst.msk [vmem:[#allocation2 + $0xf0] sm:$0xff] %vm414_vm2, %v405_v57  ;;  %421 = vst.msk [vmem:[#allocation2 + $0xe0] sm:$0xff] %vm414_vm2, %v403_v58  ;;  %v3743_v36 = vpack.c.bf16 %v954_v35, %v952_v34  ;;  %v2416_v57 = vld [vmem:[%s4086_s1 + $0xb8] sm:$0xff] }
  0xc1   : > { %439 = vst.msk [vmem:[#allocation2 + $0x178] sm:$0xff] %vm364_vm3, %v2416_v57 }
  0xc2   : > { %2859 = vmatpush1.bf16.msra.mxu0 %v3743_v36  ;;  %2923 = vmatpush1.bf16.msra.mxu1 %v3743_v36 }
  0xc3   : > { %v460_v59 = vpop.permute.xlu1 %459  ;;  %v458_v60 = vpop.permute.xlu0 %457  ;;  %v956_v37 = vld [vmem:[#allocation2 + $0xc0] sm:$0xff]  ;;  %v958_v38 = vld [vmem:[#allocation2 + $0xd0] sm:$0xff]  ;;  %2861 = vmatprep.subr.bf16.mxu0 %v3304_v3  ;;  %2925 = vmatprep.subr.bf16.mxu1 %v3304_v3 }
  0xc4   : > { %482 = vst.msk [vmem:[#allocation2 + $0x198] sm:$0xff] %vm414_vm2, %v460_v59  ;;  %481 = vst.msk [vmem:[#allocation2 + $0x188] sm:$0xff] %vm414_vm2, %v458_v60  ;;  %v3749_v39 = vpack.c.bf16 %v958_v38, %v956_v37  ;;  %v977_v58 = vld [vmem:[#allocation2 + $0x168] sm:$0xff] }
  0xc6   : > { %2863 = vmatpush1.bf16.msra.mxu0 %v3749_v39  ;;  %2927 = vmatpush1.bf16.msra.mxu1 %v3749_v39 }
  0xc7   : > { %v464_v6 = vpop.permute.xlu1 %463  ;;  %v462_v7 = vpop.permute.xlu0 %461  ;;  %v960_v40 = vld [vmem:[#allocation2 + $0xe0] sm:$0xff]  ;;  %v962_v41 = vld [vmem:[#allocation2 + $0xf0] sm:$0xff]  ;;  %2865 = vmatprep.subr.bf16.mxu0 %v3304_v3  ;;  %2929 = vmatprep.subr.bf16.mxu1 %v3304_v3 }
  0xc8   : > { %484 = vst.msk [vmem:[#allocation2 + $0x1b8] sm:$0xff] %vm414_vm2, %v464_v6  ;;  %483 = vst.msk [vmem:[#allocation2 + $0x1a8] sm:$0xff] %vm414_vm2, %v462_v7  ;;  %v3755_v44 = vpack.c.bf16 %v962_v41, %v960_v40  ;;  %v979_v59 = vld [vmem:[#allocation2 + $0x178] sm:$0xff]  ;;  %v1002_v40 = vlaneseq }
  0xc9   : > { %v3787_v61 = vpack.c.bf16 %v979_v59, %v977_v58 }
  0xca   : > { %2867 = vmatpush1.bf16.msra.mxu0 %v3755_v44  ;;  %2931 = vmatpush1.bf16.msra.mxu1 %v3755_v44  ;;  %v1003_v41 = vshrl.u32 %v1002_v40, 7 }
  0xcb   : > { %v466_v14 = vpop.permute.xlu1 %465  ;;  %v3715_v21 = vpop.permute.xlu0 %734  ;;  %2869 = vmatprep.subr.bf16.mxu0 %v3759_v45  ;;  %2933 = vmatprep.subr.bf16.mxu1 %v3759_v45  ;;  %v981_v62 = vld [vmem:[#allocation2 + $0x188] sm:$0xff]  ;;  %v983_v63 = vld [vmem:[#allocation2 + $0x198] sm:$0xff] }
  0xcc   : > { %485 = vst.msk [vmem:[#allocation2 + $0x1c8] sm:$0xff] %vm414_vm2, %v466_v14  ;;  %v3791_v0 = vpack.c.bf16 %v983_v63, %v981_v62  ;;  %v3870_v43 = vsub.s32 0, %v1003_v41  ;;  %v3872_v46 = vsub.s32 1, %v1003_v41 }
  0xce   : > { %2871 = vmatpush1.bf16.msra.mxu0 %v3304_v3  ;;  %2935 = vmatpush1.bf16.msra.mxu1 %v3304_v3  ;;  %v1005_v53 = vrot.slane %v1000_v42, %v3870_v43  ;;  %v1099_v54 = vrot.slane %v1094_v51, %v3870_v43  ;;  %v1009_v56 = vrot.slane %v1000_v42, %v3872_v46 }
  0xcf   : > { %v3723_v25 = vpop.permute.xlu1 %503  ;;  %v468_v26 = vpop.permute.xlu0 %467  ;;  %2873 = vmatprep.subr.bf16.mxu0 %v3765_v52  ;;  %2937 = vmatprep.subr.bf16.mxu1 %v3765_v52  ;;  %v985_v1 = vld [vmem:[#allocation2 + $0x1a8] sm:$0xff]  ;;  %v987_v2 = vld [vmem:[#allocation2 + $0x1b8] sm:$0xff]  ;;  %v1103_v57 = vrot.slane %v1094_v51, %v3872_v46 }
  0xd0   : > { %486 = vst.msk [vmem:[#allocation2 + $0x1d8] sm:$0xff] %vm414_vm2, %v468_v26  ;;  %v3797_v5 = vpack.c.bf16 %v987_v2, %v985_v1 }
  0xd2   : > { %2875 = vmatpush1.bf16.msra.mxu0 %v3304_v3  ;;  %2939 = vmatpush1.bf16.msra.mxu1 %v3304_v3 }
  0xd3   : > { %v470_v30 = vpop.permute.xlu1 %469  ;;  %2877 = vmatprep.subr.bf16.mxu0 %v3771_v55  ;;  %2941 = vmatprep.subr.bf16.mxu1 %v3771_v55  ;;  %v989_v6 = vld [vmem:[#allocation2 + $0x1c8] sm:$0xff] }
  0xd4   : > { %487 = vst.msk [vmem:[#allocation2 + $0x1e8] sm:$0xff] %vm414_vm2, %v470_v30  ;;  %v740_v60 = vpop.permute.xlu0 %739 }
  0xd6   : > { %2879 = vmatpush1.bf16.msra.mxu0 %v3304_v3  ;;  %2943 = vmatpush1.bf16.msra.mxu1 %v3304_v3 }
  0xd7   : > { %2881 = vmatprep.subr.bf16.mxu0 %v3787_v61  ;;  %2945 = vmatprep.subr.bf16.mxu1 %v3787_v61  ;;  %v991_v7 = vld [vmem:[#allocation2 + $0x1d8] sm:$0xff] }
  0xd8   : > { %v472_v4 = vpop.permute.xlu0 %471  ;;  %v509_v8 = vpop.permute.xlu1 %508  ;;  %v3804_v9 = vpack.c.bf16 %v991_v7, %v989_v6 }
  0xd9   : > { %488 = vst.msk [vmem:[#allocation2 + $0x1f8] sm:$0xff] %vm414_vm2, %v472_v4 }
  0xda   : > { %2883 = vmatpush1.bf16.msra.mxu0 %v3304_v3  ;;  %2947 = vmatpush1.bf16.msra.mxu1 %v3304_v3 }
  0xdb   : > { %2885 = vmatprep.subr.bf16.mxu0 %v3791_v0  ;;  %2949 = vmatprep.subr.bf16.mxu1 %v3791_v0  ;;  %v993_v15 = vld [vmem:[#allocation2 + $0x1e8] sm:$0xff] }
  0xde   : > { %2887 = vmatpush1.bf16.msra.mxu0 %v3304_v3  ;;  %2951 = vmatpush1.bf16.msra.mxu1 %v3304_v3 }
  0xdf   : > { %2889 = vmatprep.subr.bf16.mxu0 %v3797_v5  ;;  %2953 = vmatprep.subr.bf16.mxu1 %v3797_v5 }
  0xe0   : > { %v995_v19 = vld [vmem:[#allocation2 + $0x1f8] sm:$0xff] }
  0xe1   : > { %v3815_v22 = vpack.c.bf16 %v995_v19, %v993_v15  ;;  %v1192_v15 = vld [vmem:[#allocation4 + $0x2] ss:$8 sm:$0x3] }
  0xe2   : > { %2891 = vmatpush1.bf16.msra.mxu0 %v3304_v3  ;;  %2955 = vmatpush1.bf16.msra.mxu1 %v3304_v3 }
  0xe3   : > { %2893 = vmatprep.subr.bf16.mxu0 %v3804_v9  ;;  %2957 = vmatprep.subr.bf16.mxu1 %v3804_v9 }
  0xe6   : > { %2895 = vmatpush1.bf16.msra.mxu0 %v3304_v3  ;;  %2959 = vmatpush1.bf16.msra.mxu1 %v3304_v3 }
  0xe7   : > { %2897 = vmatprep.subr.bf16.mxu0 %v3815_v22  ;;  %2961 = vmatprep.subr.bf16.mxu1 %v3815_v22 }
  0xea   : > { %2899 = vmatpush1.bf16.msra.mxu0 %v3304_v3  ;;  %2963 = vmatpush1.bf16.msra.mxu1 %v3304_v3 }
  0xeb   : > { %2965 = vmatprep.subr.bf16.mxu0 %v3304_v3  ;;  %3029 = vmatprep.subr.bf16.mxu1 %v3304_v3 }
 0x124   : > { %v2637_v10 = vpop.f32.mrb[0].mxu1  ;;  %v2618_v11 = vpop.f32.mrb[0].mxu0 }
 0x125   : > { %v707_v12 = vpop.f32.mrb[1].mxu1  ;;  %v608_v13 = vpop.f32.mrb[1].mxu0  ;;  %v614_v14 = vadd.f32 %v2618_v11, %v509_v8 }
 0x126   : > { %v708_v16 = vadd.f32 %v707_v12, %v3636_v50  ;;  %v609_v17 = vadd.f32 %v608_v13, %v3723_v25  ;;  %v713_v50 = vadd.f32 %v2637_v10, %v3634_v49 }
 0x127   : > { %618 = vst.msk [vmem:[#allocation3 + $0x10] sm:$0xff] %vm364_vm3, %v614_v14 }
 0x128   : > { %718 = vrot.lane.b32.xlu1 %v708_v16, %s3303_s16  ;;  %617 = vst.msk [vmem:[#allocation3] sm:$0xff] %vm364_vm3, %v609_v17  ;;  %v1197_v16 = vrot.slane %v1192_v15, %v3870_v43  ;;  %v1201_v17 = vrot.slane %v1192_v15, %v3872_v46  ;;  %v2487_v15 = vld [vmem:[%s4090_s5 + $0x18] sm:$0xff] }
 0x12c   : > { %720 = vrot.lane.b32.xlu1 %v713_v50, %s3303_s16 }
 0x144   : > { %v2656_v23 = vpop.f32.mrb[2].mxu0  ;;  %v2675_v49 = vpop.f32.mrb[2].mxu1 }
 0x145   : > { %v820_v25 = vadd.f32 %v2656_v23, %v740_v60  ;;  %v814_v26 = vpop.f32.mrb[3].mxu0  ;;  %v913_v27 = vpop.f32.mrb[3].mxu1  ;;  %v919_v31 = vadd.f32 %v2675_v49, %v3630_v47 }
 0x146   : > { %v815_v28 = vadd.f32 %v814_v26, %v3715_v21  ;;  %v914_v30 = vadd.f32 %v913_v27, %v3632_v48 }
 0x147   : > { %824 = vst.msk [vmem:[#allocation3 + $0x18] sm:$0xff] %vm364_vm3, %v820_v25 }
 0x148   : > { %823 = vst.msk [vmem:[#allocation3 + $0x8] sm:$0xff] %vm364_vm3, %v815_v28  ;;  %924 = vrot.lane.b32.xlu0 %v914_v30, %s3303_s16 }
 0x14c   : > { %926 = vrot.lane.b32.xlu0 %v919_v31, %s3303_s16 }
 0x19a   : > { %v719_v32 = vpop.permute.xlu1 %718 }
 0x19b   : > { %724 = vst.msk [vmem:[#allocation3] sm:$0xff] %vm414_vm2, %v719_v32 }
 0x19e   : > { %v721_v34 = vpop.permute.xlu1 %720 }
 0x19f   : > { %725 = vst.msk [vmem:[#allocation3 + $0x10] sm:$0xff] %vm414_vm2, %v721_v34 }
 0x1a2   : > { %v996_v37 = vld [vmem:[#allocation3] sm:$0xff] }
 0x1a3   : > { %v1012_v59 = vmul.f32 %v1005_v53, %v996_v37 }
 0x1a6   : > { %v998_v38 = vld [vmem:[#allocation3 + $0x10] sm:$0xff] }
 0x1a7   : > { %v1014_v7 = vmul.f32 %v1005_v53, %v998_v38 }
 0x1ba   : > { %v925_v35 = vpop.permute.xlu0 %924 }
 0x1bb   : > { %930 = vst.msk [vmem:[#allocation3 + $0x8] sm:$0xff] %vm414_vm2, %v925_v35 }
 0x1be   : > { %v927_v48 = vpop.permute.xlu0 %926 }
 0x1bf   : > { %931 = vst.msk [vmem:[#allocation3 + $0x18] sm:$0xff] %vm414_vm2, %v927_v48 }
 0x1c2   : > { %v997_v21 = vld [vmem:[#allocation3 + $0x8] sm:$0xff] }
 0x1c3   : > { %1080 = vmatprep.mubr.f32.mxu0 %v997_v21  ;;  %v1013_v63 = vmul.f32 %v1009_v56, %v997_v21 }
 0x1c4   : > { %1081 = vmatmul.mubr.f32.vlgmr.msra.gmra.mrb[4].mxu0 %v996_v37 }
 0x1c5   : > { %2967 = vmatpush1.bf16.msra.mxu0 %v3709_v18 }
 0x1c6   : > { %v999_v47 = vld [vmem:[#allocation3 + $0x18] sm:$0xff]  ;;  %2969 = vmatprep.subr.bf16.mxu0 %v3304_v3 }
 0x1c7   : > { %1086 = vmatprep.mubr.f32.mxu0 %v999_v47  ;;  %v1015_v11 = vmul.f32 %v1009_v56, %v999_v47 }
 0x1c8   : > { %1087 = vmatmul.mubr.f32.gmra.mrb[6].mxu0 %v998_v38 }
 0x1c9   : > { %2971 = vmatpush1.bf16.msra.mxu0 %v3713_v20 }
 0x1ca   : > { %2973 = vmatprep.subr.bf16.mxu0 %v3304_v3 }
 0x1cd   : > { %2975 = vmatpush1.bf16.msra.mxu0 %v3721_v24 }
 0x1ce   : > { %2977 = vmatprep.subr.bf16.mxu0 %v3304_v3 }
 0x1d1   : > { %2979 = vmatpush1.bf16.msra.mxu0 %v3730_v29 }
 0x1d2   : > { %2981 = vmatprep.subr.bf16.mxu0 %v3304_v3 }
 0x1d5   : > { %2983 = vmatpush1.bf16.msra.mxu0 %v3737_v33 }
 0x1d6   : > { %2985 = vmatprep.subr.bf16.mxu0 %v3304_v3 }
 0x1d9   : > { %2987 = vmatpush1.bf16.msra.mxu0 %v3743_v36 }
 0x1da   : > { %2989 = vmatprep.subr.bf16.mxu0 %v3304_v3 }
 0x1dd   : > { %2991 = vmatpush1.bf16.msra.mxu0 %v3749_v39 }
 0x1de   : > { %2993 = vmatprep.subr.bf16.mxu0 %v3304_v3 }
 0x1e1   : > { %2995 = vmatpush1.bf16.msra.mxu0 %v3755_v44 }
 0x1e2   : > { %2997 = vmatprep.subr.bf16.mxu0 %v3759_v45 }
 0x1e5   : > { %2999 = vmatpush1.bf16.msra.mxu0 %v3304_v3 }
 0x1e6   : > { %3001 = vmatprep.subr.bf16.mxu0 %v3765_v52 }
 0x1e9   : > { %3003 = vmatpush1.bf16.msra.mxu0 %v3304_v3 }
 0x1ea   : > { %3005 = vmatprep.subr.bf16.mxu0 %v3771_v55 }
 0x1ed   : > { %3007 = vmatpush1.bf16.msra.mxu0 %v3304_v3 }
 0x1ee   : > { %3009 = vmatprep.subr.bf16.mxu0 %v3787_v61 }
 0x1f1   : > { %3011 = vmatpush1.bf16.msra.mxu0 %v3304_v3 }
 0x1f2   : > { %3013 = vmatprep.subr.bf16.mxu0 %v3791_v0 }
 0x1f5   : > { %3015 = vmatpush1.bf16.msra.mxu0 %v3304_v3 }
 0x1f6   : > { %3017 = vmatprep.subr.bf16.mxu0 %v3797_v5 }
 0x1f9   : > { %3019 = vmatpush1.bf16.msra.mxu0 %v3304_v3 }
 0x1fa   : > { %3021 = vmatprep.subr.bf16.mxu0 %v3804_v9 }
 0x1fd   : > { %3023 = vmatpush1.bf16.msra.mxu0 %v3304_v3 }
 0x1fe   : > { %3025 = vmatprep.subr.bf16.mxu0 %v3815_v22 }
 0x201   : > { %3027 = vmatpush1.bf16.msra.mxu0 %v3304_v3 }
 0x202   : > { %3093 = vmatprep.subr.bf16.mxu0 %v3304_v3 }
 0x297   : > { %v1082_v58 = vpop.f32.mrb[4].mxu0 }
 0x298   : > { %v1106_v60 = vmul.f32 %v1099_v54, %v1082_v58  ;;  %v1084_v62 = vpop.f32.mrb[5].mxu0 }
 0x299   : > { %v1107_v1 = vmul.f32 %v1103_v57, %v1084_v62  ;;  %1178 = vmatprep.mubr.f32.mxu1 %v1084_v62 }
 0x29a   : > { %v1110_v2 = vadd.f32 %v1106_v60, %v1012_v59  ;;  %1179 = vmatmul.mubr.f32.vlgmr.msra.gmra.mrb[4].mxu1 %v1082_v58 }
 0x29b   : > { %v1111_v4 = vadd.f32 %v1107_v1, %v1013_v63  ;;  %3031 = vmatpush1.bf16.msra.mxu1 %v3709_v18  ;;  %v1088_v6 = vpop.f32.mrb[6].mxu0 }
 0x29c   : > { %v1108_v8 = vmul.f32 %v1099_v54, %v1088_v6  ;;  %v1090_v10 = vpop.f32.mrb[7].mxu0  ;;  %3033 = vmatprep.subr.bf16.mxu1 %v3304_v3 }
 0x29d   : > { %v1109_v12 = vmul.f32 %v1103_v57, %v1090_v10  ;;  %1184 = vmatprep.mubr.f32.mxu1 %v1090_v10  ;;  %v1486_v57 = vld [vmem:[#allocation4 + $0x5] ss:$8 sm:$0x3] }
 0x29e   : > { %v1112_v13 = vadd.f32 %v1108_v8, %v1014_v7  ;;  %1185 = vmatmul.mubr.f32.gmra.mrb[6].mxu1 %v1088_v6  ;;  %v1491_v58 = vrot.slane %v1486_v57, %v3870_v43  ;;  %v1495_v59 = vrot.slane %v1486_v57, %v3872_v46 }
 0x29f   : > { %v1113_v14 = vadd.f32 %v1109_v12, %v1015_v11  ;;  %3035 = vmatpush1.bf16.msra.mxu1 %v3713_v20 }
 0x2a0   : > { %3037 = vmatprep.subr.bf16.mxu1 %v3304_v3 }
 0x2a3   : > { %3039 = vmatpush1.bf16.msra.mxu1 %v3721_v24 }
 0x2a4   : > { %3041 = vmatprep.subr.bf16.mxu1 %v3304_v3 }
 0x2a7   : > { %3043 = vmatpush1.bf16.msra.mxu1 %v3730_v29 }
 0x2a8   : > { %3045 = vmatprep.subr.bf16.mxu1 %v3304_v3 }
 0x2ab   : > { %3047 = vmatpush1.bf16.msra.mxu1 %v3737_v33 }
 0x2ac   : > { %3049 = vmatprep.subr.bf16.mxu1 %v3304_v3 }
 0x2af   : > { %3051 = vmatpush1.bf16.msra.mxu1 %v3743_v36 }
 0x2b0   : > { %3053 = vmatprep.subr.bf16.mxu1 %v3304_v3 }
 0x2b3   : > { %3055 = vmatpush1.bf16.msra.mxu1 %v3749_v39 }
 0x2b4   : > { %3057 = vmatprep.subr.bf16.mxu1 %v3304_v3 }
 0x2b7   : > { %3059 = vmatpush1.bf16.msra.mxu1 %v3755_v44 }
 0x2b8   : > { %3061 = vmatprep.subr.bf16.mxu1 %v3759_v45 }
 0x2bb   : > { %3063 = vmatpush1.bf16.msra.mxu1 %v3304_v3 }
 0x2bc   : > { %3065 = vmatprep.subr.bf16.mxu1 %v3765_v52 }
 0x2bf   : > { %3067 = vmatpush1.bf16.msra.mxu1 %v3304_v3 }
 0x2c0   : > { %3069 = vmatprep.subr.bf16.mxu1 %v3771_v55 }
 0x2c3   : > { %3071 = vmatpush1.bf16.msra.mxu1 %v3304_v3 }
 0x2c4   : > { %3073 = vmatprep.subr.bf16.mxu1 %v3787_v61 }
 0x2c7   : > { %3075 = vmatpush1.bf16.msra.mxu1 %v3304_v3 }
 0x2c8   : > { %3077 = vmatprep.subr.bf16.mxu1 %v3791_v0 }
 0x2cb   : > { %3079 = vmatpush1.bf16.msra.mxu1 %v3304_v3 }
 0x2cc   : > { %3081 = vmatprep.subr.bf16.mxu1 %v3797_v5 }
 0x2cf   : > { %3083 = vmatpush1.bf16.msra.mxu1 %v3304_v3 }
 0x2d0   : > { %3085 = vmatprep.subr.bf16.mxu1 %v3804_v9 }
 0x2d3   : > { %3087 = vmatpush1.bf16.msra.mxu1 %v3304_v3 }
 0x2d4   : > { %3089 = vmatprep.subr.bf16.mxu1 %v3815_v22 }
 0x2d7   : > { %3091 = vmatpush1.bf16.msra.mxu1 %v3304_v3 }
 0x36d   : > { %v1180_v19 = vpop.f32.mrb[4].mxu1 }
 0x36e   : > { %v1204_v50 = vmul.f32 %v1197_v16, %v1180_v19  ;;  %v1182_v23 = vpop.f32.mrb[5].mxu1 }
 0x36f   : > { %v1205_v49 = vmul.f32 %v1201_v17, %v1182_v23  ;;  %1276 = vmatprep.mubr.f32.mxu0 %v1182_v23 }
 0x370   : > { %v1208_v25 = vadd.f32 %v1204_v50, %v1110_v2  ;;  %1277 = vmatmul.mubr.f32.vlgmr.msra.gmra.mrb[8].mxu0 %v1180_v19 }
 0x371   : > { %v1209_v26 = vadd.f32 %v1205_v49, %v1111_v4  ;;  %3095 = vmatpush1.bf16.msra.mxu0 %v3709_v18  ;;  %v1186_v27 = vpop.f32.mrb[6].mxu1  ;;  %v1290_v18 = vld [vmem:[#allocation4 + $0x3] ss:$8 sm:$0x3] }
 0x372   : > { %v1206_v28 = vmul.f32 %v1197_v16, %v1186_v27  ;;  %v1188_v30 = vpop.f32.mrb[7].mxu1  ;;  %3097 = vmatprep.subr.bf16.mxu0 %v3304_v3 }
 0x373   : > { %v1207_v31 = vmul.f32 %v1201_v17, %v1188_v30  ;;  %1282 = vmatprep.mubr.f32.mxu0 %v1188_v30 }
 0x374   : > { %v1210_v32 = vadd.f32 %v1206_v28, %v1112_v13  ;;  %1283 = vmatmul.mubr.f32.gmra.mrb[10].mxu0 %v1186_v27 }
 0x375   : > { %v1211_v34 = vadd.f32 %v1207_v31, %v1113_v14  ;;  %3099 = vmatpush1.bf16.msra.mxu0 %v3713_v20  ;;  %v1295_v20 = vrot.slane %v1290_v18, %v3870_v43  ;;  %v2486_v14 = vld [vmem:[%s4090_s5 + $0x10] sm:$0xff] }
 0x376   : > { %3101 = vmatprep.subr.bf16.mxu0 %v3304_v3  ;;  %v3160_v16 = vpack.c.bf16 %v2487_v15, %v2486_v14 }
 0x379   : > { %3103 = vmatpush1.bf16.msra.mxu0 %v3721_v24  ;;  %v1299_v24 = vrot.slane %v1290_v18, %v3872_v46 }
 0x37a   : > { %3105 = vmatprep.subr.bf16.mxu0 %v3304_v3 }
 0x37d   : > { %3107 = vmatpush1.bf16.msra.mxu0 %v3730_v29 }
 0x37e   : > { %3109 = vmatprep.subr.bf16.mxu0 %v3304_v3 }
 0x381   : > { %3111 = vmatpush1.bf16.msra.mxu0 %v3737_v33 }
 0x382   : > { %3113 = vmatprep.subr.bf16.mxu0 %v3304_v3 }
 0x385   : > { %3115 = vmatpush1.bf16.msra.mxu0 %v3743_v36 }
 0x386   : > { %3117 = vmatprep.subr.bf16.mxu0 %v3304_v3 }
 0x389   : > { %3119 = vmatpush1.bf16.msra.mxu0 %v3749_v39 }
 0x38a   : > { %3121 = vmatprep.subr.bf16.mxu0 %v3304_v3 }
 0x38d   : > { %3123 = vmatpush1.bf16.msra.mxu0 %v3755_v44 }
 0x38e   : > { %3125 = vmatprep.subr.bf16.mxu0 %v3759_v45 }
 0x391   : > { %3127 = vmatpush1.bf16.msra.mxu0 %v3304_v3 }
 0x392   : > { %3129 = vmatprep.subr.bf16.mxu0 %v3765_v52 }
 0x395   : > { %3131 = vmatpush1.bf16.msra.mxu0 %v3304_v3 }
 0x396   : > { %3133 = vmatprep.subr.bf16.mxu0 %v3771_v55 }
 0x399   : > { %3135 = vmatpush1.bf16.msra.mxu0 %v3304_v3 }
 0x39a   : > { %3137 = vmatprep.subr.bf16.mxu0 %v3787_v61 }
 0x39d   : > { %3139 = vmatpush1.bf16.msra.mxu0 %v3304_v3 }
 0x39e   : > { %3141 = vmatprep.subr.bf16.mxu0 %v3791_v0 }
 0x3a1   : > { %3143 = vmatpush1.bf16.msra.mxu0 %v3304_v3 }
 0x3a2   : > { %3145 = vmatprep.subr.bf16.mxu0 %v3797_v5 }
 0x3a5   : > { %3147 = vmatpush1.bf16.msra.mxu0 %v3304_v3 }
 0x3a6   : > { %3149 = vmatprep.subr.bf16.mxu0 %v3804_v9  ;;  %v1388_v9 = vld [vmem:[#allocation4 + $0x4] ss:$8 sm:$0x3] }
 0x3a7   : > { %v1397_v35 = vrot.slane %v1388_v9, %v3872_v46  ;;  %v1515_v46 = vld [vmem:[%s4090_s5 + $0x8] sm:$0xff] }
 0x3a9   : > { %3151 = vmatpush1.bf16.msra.mxu0 %v3304_v3 }
 0x3aa   : > { %3153 = vmatprep.subr.bf16.mxu0 %v3815_v22  ;;  %v1393_v22 = vrot.slane %v1388_v9, %v3870_v43  ;;  %v1514_v43 = vld [vmem:[%s4090_s5] sm:$0xff] }
 0x3ab   : > { %v3156_v13 = vpack.c.bf16 %v1515_v46, %v1514_v43 }
 0x3ad   : > { %3155 = vmatpush1.bf16.msra.mxu0 %v3304_v3  ;;  %3157 = vmatprep.subr.bf16.mxu1 %v3156_v13 }
 0x443   : > { %v1278_v29 = vpop.f32.mrb[8].mxu0 }
 0x444   : > { %v1302_v33 = vmul.f32 %v1295_v20, %v1278_v29  ;;  %v1280_v36 = vpop.f32.mrb[9].mxu0 }
 0x445   : > { %v1303_v39 = vmul.f32 %v1299_v24, %v1280_v36  ;;  %1374 = vmatprep.mubr.f32.mxu1 %v1280_v36  ;;  %v2507_v36 = vld [vmem:[%s4090_s5 + $0x38] sm:$0xff] }
 0x446   : > { %v1306_v44 = vadd.f32 %v1302_v33, %v1208_v25  ;;  %1375 = vmatmul.mubr.f32.vlgmr.msra.gmra.mrb[8].mxu1 %v1278_v29  ;;  %v2496_v25 = vld [vmem:[%s4090_s5 + $0x20] sm:$0xff]  ;;  %v2506_v33 = vld [vmem:[%s4090_s5 + $0x30] sm:$0xff] }
 0x447   : > { %v1307_v45 = vadd.f32 %v1303_v39, %v1209_v26  ;;  %v1284_v52 = vpop.f32.mrb[10].mxu0  ;;  %3159 = vmatpush3.bf16.msra.mxu1 %v3156_v13  ;;  %v2497_v26 = vld [vmem:[%s4090_s5 + $0x28] sm:$0xff]  ;;  %v3168_v39 = vpack.c.bf16 %v2507_v36, %v2506_v33 }
 0x448   : > { %v1304_v55 = vmul.f32 %v1295_v20, %v1284_v52  ;;  %v1286_v61 = vpop.f32.mrb[11].mxu0  ;;  %3161 = vmatprep.subr.bf16.mxu1 %v3160_v16  ;;  %v3164_v27 = vpack.c.bf16 %v2497_v26, %v2496_v25 }
 0x449   : > { %v1305_v0 = vmul.f32 %v1299_v24, %v1286_v61  ;;  %1380 = vmatprep.mubr.f32.mxu1 %v1286_v61 }
 0x44a   : > { %v1308_v5 = vadd.f32 %v1304_v55, %v1210_v32  ;;  %1381 = vmatmul.mubr.f32.gmra.mrb[10].mxu1 %v1284_v52 }
 0x44b   : > { %v1309_v3 = vadd.f32 %v1305_v0, %v1211_v34 }
 0x519   : > { %v1376_v48 = vpop.f32.mrb[8].mxu1 }
 0x51a   : > { %v1400_v21 = vmul.f32 %v1393_v22, %v1376_v48  ;;  %v1378_v37 = vpop.f32.mrb[9].mxu1 }
 0x51b   : > { %v1401_v47 = vmul.f32 %v1397_v35, %v1378_v37  ;;  %1472 = vmatprep.mubr.f32.mxu0 %v1378_v37 }
 0x51c   : > { %v1404_v38 = vadd.f32 %v1400_v21, %v1306_v44  ;;  %1473 = vmatmul.mubr.f32.vlgmr.msra.gmra.mrb[12].mxu0 %v1376_v48 }
 0x51d   : > { %v1405_v40 = vadd.f32 %v1401_v47, %v1307_v45  ;;  %v1382_v41 = vpop.f32.mrb[10].mxu1 }
 0x51e   : > { %v1402_v42 = vmul.f32 %v1393_v22, %v1382_v41  ;;  %v1384_v51 = vpop.f32.mrb[11].mxu1 }
 0x51f   : > { %v1403_v53 = vmul.f32 %v1397_v35, %v1384_v51  ;;  %1478 = vmatprep.mubr.f32.mxu0 %v1384_v51 }
 0x520   : > { %v1406_v54 = vadd.f32 %v1402_v42, %v1308_v5  ;;  %1479 = vmatmul.mubr.f32.gmra.mrb[14].mxu0 %v1382_v41 }
 0x521   : > { %v1407_v56 = vadd.f32 %v1403_v53, %v1309_v3 }
 0x5ef   : > { %v1474_v60 = vpop.f32.mrb[12].mxu0 }
 0x5f0   : > { %v1498_v62 = vmul.f32 %v1491_v58, %v1474_v60  ;;  %v1476_v63 = vpop.f32.mrb[13].mxu0 }
 0x5f1   : > { %v1499_v1 = vmul.f32 %v1495_v59, %v1476_v63 }
 0x5f2   : > { %v1502_v2 = vadd.f32 %v1498_v62, %v1404_v38 }
 0x5f3   : > { %v1503_v4 = vadd.f32 %v1499_v1, %v1405_v40  ;;  %v1480_v6 = vpop.f32.mrb[14].mxu0 }
 0x5f4   : > { %v1500_v7 = vmul.f32 %v1491_v58, %v1480_v6  ;;  %1691 = vrot.lane.b32.xlu0 %v1502_v2, %s3303_s16  ;;  %v1482_v8 = vpop.f32.mrb[15].mxu0 }
 0x5f5   : > { %v1501_v10 = vmul.f32 %v1495_v59, %v1482_v8 }
 0x5f6   : > { %v1504_v11 = vadd.f32 %v1500_v7, %v1406_v54 }
 0x5f7   : > { %v1505_v12 = vadd.f32 %v1501_v10, %v1407_v56  ;;  %v2477_v56 = vld [vmem:[%s4091_s6] ss:$0 sm:$0xff] }
 0x5f8   : > { %2043 = vrot.lane.b32.xlu0 %v1503_v4, %s3303_s16  ;;  %1693 = vrot.lane.b32.xlu1 %v1504_v11, %s3303_s16 }
 0x5fc   : > { %2045 = vrot.lane.b32.xlu1 %v1505_v12, %s3303_s16 }
 0x616   : > { %1516 = vxpose.xlu0.b32.start [1/2] (short) (narrow) %v1502_v2, 64 }
 0x61a   : > { %1517 = vxpose.xlu0.b32.end [2/2] (short) (narrow) %v1504_v11, 64 }
 0x633   : > { %1869 = vxpose.xlu0.b32.start [1/2] (short) (narrow) %v1503_v4, 64 }
 0x637   : > { %1870 = vxpose.xlu0.b32.end [2/2] (short) (narrow) %v1505_v12, 64 }
 0x666   : > { %v1692_v17 = vpop.permute.xlu0 %1691 }
 0x667   : > { %1697 = vxpose.xlu1.b32.start [1/2] (short) (narrow) %v1692_v17, 64 }
 0x66a   : > { %v1694_v19 = vpop.permute.xlu1 %1693  ;;  %v2044_v50 = vpop.permute.xlu0 %2043 }
 0x66b   : > { %1698 = vxpose.xlu1.b32.end [2/2] (short) (narrow) %v1694_v19, 64 }
 0x66e   : > { %v2046_v23 = vpop.permute.xlu1 %2045 }
 0x684   : > { %2049 = vxpose.xlu1.b32.start [1/2] (short) (narrow) %v2044_v50, 64 }
 0x688   : > { %2050 = vxpose.xlu1.b32.end [2/2] (short) (narrow) %v2046_v23, 64 }
 0x696   : > { %v1532_v49 = vpop.trf.xlu0 }
 0x697   : > { %2680 = vmatprep.mubr.msk.f32.mxu1 %vm1548_vm4, %v1532_v49 }
 0x69a   : > { %v1533_v28 = vpop.trf.xlu0 }
 0x69b   : > { %2681 = vmatmul.mubr.msk.f32.vlgmr.msra.gmra.mrb[12].mxu1 %vm1548_vm4, %v1533_v28 }
 0x69c   : > { %3163 = vmatpush3.bf16.msra.mxu1 %v3160_v16 }
 0x69d   : > { %3165 = vmatprep.subr.bf16.mxu1 %v3164_v27 }
 0x69e   : > { %v1534_v30 = vpop.trf.xlu0 }
 0x69f   : > { %2683 = vmatprep.mubr.msk.f32.mxu1 %vm1548_vm4, %v1534_v30 }
 0x6a2   : > { %v1535_v31 = vpop.trf.xlu0 }
 0x6a3   : > { %2684 = vmatmul.mubr.msk.f32.gmra.mrb[14].mxu1 %vm1548_vm4, %v1535_v31 }
 0x6a6   : > { %v1536_v32 = vpop.trf.xlu0 }
 0x6a7   : > { %2686 = vmatprep.mubr.msk.f32.mxu1 %vm1548_vm4, %v1536_v32 }
 0x6aa   : > { %v1537_v34 = vpop.trf.xlu0 }
 0x6ab   : > { %2687 = vmatmul.mubr.msk.f32.gmra.mrb[16].mxu1 %vm1548_vm4, %v1537_v34 }
 0x6ae   : > { %v1538_v18 = vpop.trf.xlu0 }
 0x6af   : > { %2689 = vmatprep.mubr.msk.f32.mxu1 %vm1548_vm4, %v1538_v18 }
 0x6b2   : > { %v1539_v20 = vpop.trf.xlu0 }
 0x6b3   : > { %2690 = vmatmul.mubr.msk.f32.gmra.mrb[18].mxu1 %vm1548_vm4, %v1539_v20 }
 0x6b6   : > { %v1885_v29 = vpop.trf.xlu0 }
 0x6ba   : > { %v1886_v45 = vpop.trf.xlu0 }
 0x6be   : > { %v1887_v61 = vpop.trf.xlu0 }
 0x6c2   : > { %v1888_v5 = vpop.trf.xlu0 }
 0x6c6   : > { %v1889_v22 = vpop.trf.xlu0 }
 0x6ca   : > { %v1890_v48 = vpop.trf.xlu0 }
 0x6ce   : > { %v1891_v47 = vpop.trf.xlu0 }
 0x6d2   : > { %v1892_v40 = vpop.trf.xlu0 }
 0x6e7   : > { %v1713_v24 = vpop.trf.xlu1 }
 0x6e8   : > { %2696 = vmatprep.mubr.msk.f32.mxu1 %vm1548_vm4, %v1713_v24 }
 0x6eb   : > { %v1714_v44 = vpop.trf.xlu1 }
 0x6ec   : > { %2697 = vmatmul.mubr.msk.f32.vlgmr.msra.gmra.mrb[12].mxu1 %vm1548_vm4, %v1714_v44 }
 0x6ed   : > { %3167 = vmatpush3.bf16.msra.mxu1 %v3164_v27 }
 0x6ee   : > { %3169 = vmatprep.subr.bf16.mxu1 %v3168_v39 }
 0x6ef   : > { %v1715_v52 = vpop.trf.xlu1 }
 0x6f0   : > { %2699 = vmatprep.mubr.msk.f32.mxu1 %vm1548_vm4, %v1715_v52 }
 0x6f3   : > { %v1716_v55 = vpop.trf.xlu1 }
 0x6f4   : > { %2700 = vmatmul.mubr.msk.f32.gmra.mrb[14].mxu1 %vm1548_vm4, %v1716_v55 }
 0x6f7   : > { %v1717_v0 = vpop.trf.xlu1 }
 0x6f8   : > { %2702 = vmatprep.mubr.msk.f32.mxu1 %vm1548_vm4, %v1717_v0 }
 0x6fb   : > { %v1718_v3 = vpop.trf.xlu1 }
 0x6fc   : > { %2703 = vmatmul.mubr.msk.f32.gmra.mrb[16].mxu1 %vm1548_vm4, %v1718_v3 }
 0x6ff   : > { %v1719_v9 = vpop.trf.xlu1 }
 0x700   : > { %2705 = vmatprep.mubr.msk.f32.mxu1 %vm1548_vm4, %v1719_v9 }
 0x703   : > { %v1720_v35 = vpop.trf.xlu1 }
 0x704   : > { %2706 = vmatmul.mubr.msk.f32.gmra.mrb[18].mxu1 %vm1548_vm4, %v1720_v35 }
 0x705   : > { %2712 = vmatprep.mubr.msk.f32.mxu1 %vm1548_vm4, %v1885_v29 }
 0x707   : > { %v2065_v21 = vpop.trf.xlu1 }
 0x708   : > { %2713 = vmatmul.mubr.msk.f32.vlgmr.msra.gmra.mrb[12].mxu1 %vm1548_vm4, %v1886_v45 }
 0x709   : > { %3171 = vmatpush3.bf16.msra.mxu1 %v3168_v39  ;;  %2715 = vmatprep.mubr.msk.f32.mxu1 %vm1548_vm4, %v1887_v61 }
 0x70b   : > { %v2066_v37 = vpop.trf.xlu1 }
 0x70c   : > { %2716 = vmatmul.mubr.msk.f32.gmra.mrb[14].mxu1 %vm1548_vm4, %v1888_v5 }
 0x70d   : > { %2718 = vmatprep.mubr.msk.f32.mxu1 %vm1548_vm4, %v1889_v22 }
 0x70f   : > { %v2067_v38 = vpop.trf.xlu1 }
 0x710   : > { %2719 = vmatmul.mubr.msk.f32.gmra.mrb[16].mxu1 %vm1548_vm4, %v1890_v48 }
 0x711   : > { %2721 = vmatprep.mubr.msk.f32.mxu1 %vm1548_vm4, %v1891_v47 }
 0x713   : > { %v2068_v41 = vpop.trf.xlu1 }
 0x714   : > { %2722 = vmatmul.mubr.msk.f32.gmra.mrb[18].mxu1 %vm1548_vm4, %v1892_v40 }
 0x715   : > { %2728 = vmatprep.mubr.msk.f32.mxu1 %vm1548_vm4, %v2065_v21 }
 0x717   : > { %v2069_v42 = vpop.trf.xlu1 }
 0x718   : > { %2729 = vmatmul.mubr.msk.f32.vlgmr.msra.gmra.mrb[12].mxu1 %vm1548_vm4, %v2066_v37 }
 0x719   : > { %2731 = vmatprep.mubr.msk.f32.mxu1 %vm1548_vm4, %v2067_v38 }
 0x71b   : > { %v2070_v51 = vpop.trf.xlu1 }
 0x71c   : > { %2732 = vmatmul.mubr.msk.f32.gmra.mrb[14].mxu1 %vm1548_vm4, %v2068_v41 }
 0x71d   : > { %2734 = vmatprep.mubr.msk.f32.mxu1 %vm1548_vm4, %v2069_v42 }
 0x71f   : > { %v2071_v53 = vpop.trf.xlu1 }
 0x720   : > { %2735 = vmatmul.mubr.msk.f32.gmra.mrb[16].mxu1 %vm1548_vm4, %v2070_v51 }
 0x721   : > { %2737 = vmatprep.mubr.msk.f32.mxu1 %vm1548_vm4, %v2071_v53 }
 0x723   : > { %v2072_v54 = vpop.trf.xlu1 }
 0x724   : > { %2738 = vmatmul.mubr.msk.f32.gmra.mrb[18].mxu1 %vm1548_vm4, %v2072_v54 }
 0x7eb   : > { %v2730_v57 = vpop.f32.mrb[12].mxu1 }
 0x7ec   : > { %v3172_v58 = vadd.f32 %v2730_v57, %v2477_v56  ;;  %v2171_v59 = vpop.f32.mrb[13].mxu1 }
 0x7ed   : > { %v3173_v60 = vadd.f32 %v2477_v56, %v2171_v59 }
 0x7ee   : > { %v2222_v62 = vsel %vm2218_vm5, %v3172_v58, -inf }
 0x7ef   : > { %2223 = vmax.xlane.f32.xlu1 %v2222_v62  ;;  %v2733_v63 = vpop.f32.mrb[14].mxu1  ;;  %v2219_v1 = vsel %vm2218_vm5, %v3173_v60, -inf }
 0x7f0   : > { %v3174_v2 = vadd.f32 %v2733_v63, %v2477_v56  ;;  %2220 = vmax.xlane.f32.xlu0 %v2219_v1  ;;  %v2181_v4 = vpop.f32.mrb[15].mxu1 }
 0x7f1   : > { %v3175_v7 = vadd.f32 %v2477_v56, %v2181_v4 }
 0x7f2   : > { %v2228_v6 = vsel %vm2218_vm5, %v3174_v2, -inf }
 0x7f3   : > { %v2736_v8 = vpop.f32.mrb[16].mxu1  ;;  %v2225_v46 = vsel %vm2218_vm5, %v3175_v7, -inf }
 0x7f4   : > { %2229 = vmax.xlane.f32.xlu0 %v2228_v6  ;;  %v2191_v10 = vpop.f32.mrb[17].mxu1  ;;  %v3176_v12 = vadd.f32 %v2736_v8, %v2477_v56 }
 0x7f5   : > { %v3177_v11 = vadd.f32 %v2477_v56, %v2191_v10 }
 0x7f6   : > { %v2234_v17 = vsel %vm2218_vm5, %v3176_v12, -inf }
 0x7f7   : > { %v2739_v43 = vpop.f32.mrb[18].mxu1  ;;  %v2231_v13 = vsel %vm2218_vm5, %v3177_v11, -inf }
 0x7f8   : > { %2226 = vmax.xlane.f32.xlu0 %v2225_v46  ;;  %2232 = vmax.xlane.f32.xlu1 %v2231_v13  ;;  %v2201_v14 = vpop.f32.mrb[19].mxu1  ;;  %v3178_v16 = vadd.f32 %v2739_v43, %v2477_v56 }
 0x7f9   : > { %v3179_v15 = vadd.f32 %v2477_v56, %v2201_v14 }
 0x7fa   : > { %v2240_v50 = vsel %vm2218_vm5, %v3178_v16, -inf }
 0x7fb   : > { %v2237_v19 = vsel %vm2218_vm5, %v3179_v15, -inf }
 0x7fc   : > { %2235 = vmax.xlane.f32.xlu0 %v2234_v17  ;;  %2238 = vmax.xlane.f32.xlu1 %v2237_v19 }
 0x800   : > { %2241 = vmax.xlane.f32.xlu0 %v2240_v50 }
 0x87c   : > { %v2224_v23 = vpop.xlane.xlu1 %2223 }
 0x87d   : > { %v4019_v49 = vsub.f32 %v3172_v58, %v2224_v23  ;;  %v2221_v25 = vpop.xlane.xlu0 %2220 }
 0x87e   : > { %v4021_v26 = vsub.f32 %v3173_v60, %v2221_v25 }
 0x87f   : > { %v2253_v27 = vmul.f32 1.442695, %v4019_v49 }
 0x880   : > { %v2251_v28 = vmul.f32 1.442695, %v4021_v26 }
 0x881   : > { %3228 = vpow2.f32 %v2253_v27  ;;  %v2230_v30 = vpop.xlane.xlu0 %2229 }
 0x882   : > { %3230 = vpow2.f32 %v2251_v28  ;;  %v4025_v31 = vsub.f32 %v3174_v2, %v2230_v30 }
 0x884   : > { %v2257_v32 = vmul.f32 1.442695, %v4025_v31 }
 0x885   : > { %v2227_v34 = vpop.xlane.xlu0 %2226  ;;  %v2233_v18 = vpop.xlane.xlu1 %2232 }
 0x886   : > { %3232 = vpow2.f32 %v2257_v32  ;;  %v4028_v20 = vsub.f32 %v3175_v7, %v2227_v34  ;;  %v4030_v24 = vsub.f32 %v3177_v11, %v2233_v18 }
 0x888   : > { %v2255_v29 = vmul.f32 1.442695, %v4028_v20  ;;  %v2259_v33 = vmul.f32 1.442695, %v4030_v24 }
 0x889   : > { %v2236_v36 = vpop.xlane.xlu0 %2235  ;;  %v2239_v39 = vpop.xlane.xlu1 %2238 }
 0x88a   : > { %3234 = vpow2.f32 %v2255_v29  ;;  %v4034_v44 = vsub.f32 %v3176_v12, %v2236_v36  ;;  %v4036_v45 = vsub.f32 %v3179_v15, %v2239_v39 }
 0x88b   : > { %v3229_v52 = vpop.eup %3228  ;;  %3236 = vpow2.f32 %v2259_v33 }
 0x88c   : > { %v3231_v55 = vpop.eup %3230  ;;  %v2261_v61 = vmul.f32 1.442695, %v4034_v44  ;;  %v2263_v0 = vmul.f32 1.442695, %v4036_v45  ;;  %v2270_v5 = vsel %vm2218_vm5, %v3229_v52, 0.0 }
 0x88d   : > { %v2242_v3 = vpop.xlane.xlu0 %2241  ;;  %2271 = vadd.xlane.f32.xlu0 %v2270_v5  ;;  %v2267_v9 = vsel %vm2218_vm5, %v3231_v55, 0.0 }
 0x88e   : > { %3238 = vpow2.f32 %v2261_v61  ;;  %v4042_v22 = vsub.f32 %v3178_v16, %v2242_v3  ;;  %2268 = vadd.xlane.f32.xlu1 %v2267_v9 }
 0x88f   : > { %3240 = vpow2.f32 %v2263_v0 }
 0x890   : > { %v3233_v35 = vpop.eup %3232  ;;  %v2265_v48 = vmul.f32 1.442695, %v4042_v22 }
 0x891   : > { %v2276_v21 = vsel %vm2218_vm5, %v3233_v35, 0.0 }
 0x892   : > { %3242 = vpow2.f32 %v2265_v48  ;;  %2277 = vadd.xlane.f32.xlu0 %v2276_v21 }
 0x894   : > { %v3235_v37 = vpop.eup %3234 }
 0x895   : > { %v2273_v47 = vsel %vm2218_vm5, %v3235_v37, 0.0  ;;  %v3237_v38 = vpop.eup %3236 }
 0x896   : > { %2274 = vadd.xlane.f32.xlu1 %v2273_v47  ;;  %v2279_v42 = vsel %vm2218_vm5, %v3237_v38, 0.0 }
 0x898   : > { %v3239_v40 = vpop.eup %3238 }
 0x899   : > { %v2282_v41 = vsel %vm2218_vm5, %v3239_v40, 0.0  ;;  %v3241_v51 = vpop.eup %3240 }
 0x89a   : > { %2283 = vadd.xlane.f32.xlu0 %v2282_v41  ;;  %2280 = vadd.xlane.f32.xlu1 %v2279_v42  ;;  %v2285_v56 = vsel %vm2218_vm5, %v3241_v51, 0.0 }
 0x89c   : > { %v3243_v53 = vpop.eup %3242 }
 0x89d   : > { %v2288_v54 = vsel %vm2218_vm5, %v3243_v53, 0.0 }
 0x89e   : > { %2289 = vadd.xlane.f32.xlu0 %v2288_v54  ;;  %2286 = vadd.xlane.f32.xlu1 %v2285_v56 }
 0x91a   : > { %v2272_v57 = vpop.xlane.xlu0 %2271 }
 0x91b   : > { %3244 = vlog2.f32 %v2272_v57  ;;  %v2269_v58 = vpop.xlane.xlu1 %2268 }
 0x91c   : > { %3246 = vlog2.f32 %v2269_v58 }
 0x91f   : > { %v2278_v59 = vpop.xlane.xlu0 %2277 }
 0x920   : > { %3248 = vlog2.f32 %v2278_v59 }
 0x923   : > { %v2275_v60 = vpop.xlane.xlu1 %2274 }
 0x924   : > { %3250 = vlog2.f32 %v2275_v60 }
 0x925   : > { %v3245_v62 = vpop.eup %3244 }
 0x926   : > { %v3247_v63 = vpop.eup %3246  ;;  %v2294_v1 = vmul.f32 0.6931472, %v3245_v62 }
 0x927   : > { %v2292_v2 = vmul.f32 0.6931472, %v3247_v63  ;;  %v2284_v4 = vpop.xlane.xlu0 %2283  ;;  %v2281_v6 = vpop.xlane.xlu1 %2280 }
 0x928   : > { %v2308_v7 = vsub.f32 %v4019_v49, %v2294_v1  ;;  %3252 = vlog2.f32 %v2284_v4 }
 0x929   : > { %v2307_v8 = vsub.f32 %v4021_v26, %v2292_v2  ;;  %3254 = vlog2.f32 %v2281_v6 }
 0x92a   : > { %v3249_v10 = vpop.eup %3248  ;;  %2316 = vst.msk [vmem:[%s4056_s20 + $0x8] sm:$0xff] %vm2218_vm5, %v2308_v7 }
 0x92b   : > { %2315 = vst.msk [vmem:[%s4056_s20] sm:$0xff] %vm2218_vm5, %v2307_v8  ;;  %v2298_v11 = vmul.f32 0.6931472, %v3249_v10  ;;  %v2290_v12 = vpop.xlane.xlu0 %2289  ;;  %v2287_v43 = vpop.xlane.xlu1 %2286 }
 0x92c   : > { %3256 = vlog2.f32 %v2290_v12 }
 0x92d   : > { %v2310_v46 = vsub.f32 %v4025_v31, %v2298_v11  ;;  %3258 = vlog2.f32 %v2287_v43 }
 0x92e   : > { %v3251_v13 = vpop.eup %3250 }
 0x92f   : > { %2318 = vst.msk [vmem:[%s4056_s20 + $0x18] sm:$0xff] %vm2218_vm5, %v2310_v46  ;;  %v2296_v14 = vmul.f32 0.6931472, %v3251_v13 }
 0x931   : > { %v2309_v15 = vsub.f32 %v4028_v20, %v2296_v14 }
 0x932   : > { %v3253_v16 = vpop.eup %3252 }
 0x933   : > { %v3255_v17 = vpop.eup %3254  ;;  %2317 = vst.msk [vmem:[%s4056_s20 + $0x10] sm:$0xff] %vm2218_vm5, %v2309_v15  ;;  %v2302_v19 = vmul.f32 0.6931472, %v3253_v16 }
 0x934   : > { %v2300_v50 = vmul.f32 0.6931472, %v3255_v17 }
 0x935   : > { %v2312_v23 = vsub.f32 %v4034_v44, %v2302_v19 }
 0x936   : > { %v3257_v49 = vpop.eup %3256  ;;  %v2311_v25 = vsub.f32 %v4030_v24, %v2300_v50 }
 0x937   : > { %v3259_v26 = vpop.eup %3258  ;;  %2320 = vst.msk [vmem:[%s4056_s20 + $0x28] sm:$0xff] %vm2218_vm5, %v2312_v23  ;;  %v2306_v27 = vmul.f32 0.6931472, %v3257_v49 }
 0x938   : > { %2319 = vst.msk [vmem:[%s4056_s20 + $0x20] sm:$0xff] %vm2218_vm5, %v2311_v25  ;;  %v2304_v28 = vmul.f32 0.6931472, %v3259_v26 }
 0x939   : > { %v2314_v30 = vsub.f32 %v4042_v22, %v2306_v27 }
 0x93a   : > { %v2313_v31 = vsub.f32 %v4036_v45, %v2304_v28 }
 0x93b   : > { %2322 = vst.msk [vmem:[%s4056_s20 + $0x38] sm:$0xff] %vm2218_vm5, %v2314_v30 }
 0x93c   : > { %2321 = vst.msk [vmem:[%s4056_s20 + $0x30] sm:$0xff] %vm2218_vm5, %v2313_v31 }
 0x93d PF: > { %s18_s24 = sadd.s32 1, %s3298_s24  }
 0x93e   : > { %p15_p2 = scmp.ge.s32.totalorder %s18_s24, 4  }
 0x940   :  { %17 = sbr.rel (!%p15_p2) target bundleno = 1 (0x1), region = 100 }
 0x947   :  { %2344 = vsyncpa [#allocation5], 1 }
 0x948   :  { %2346 = vsyncpa [#allocation5 + $0x1], 1 }

</bundles_post_ra>
